<compile_context>
chip_gen: v7x
topology: tpu7x:2x2x1
jax: 0.10.0
libtpu: 0.0.40
codegen_flags: <defaults>
</compile_context>

<pallas_src>
import functools

import jax
import jax.numpy as jnp
from jax.experimental import pallas as pl
from jax.experimental.pallas import tpu as pltpu


# ----------------------------------------------------------------------------
# Generation-aware tiling / VMEM budget
# ----------------------------------------------------------------------------
def _device_tuning():
    """v5e/v6e: 1 TensorCore, 128 MiB physical VMEM -> wider weight tiles and a
    higher scoped-VMEM limit.  v7x (and unknown): 64 MiB physical VMEM, keep the
    conservative 32 MiB scoped default and <=1024-wide tiles."""
    try:
        kind = jax.devices()[0].device_kind.lower()
    except Exception:  # pragma: no cover - defensive, never expected on TPU
        kind = ""
    if ("v5" in kind) or ("v6" in kind):
        return {"max_tile_bytes": 16 * 1024 * 1024, "tn_cap": 2048,
                "vmem_limit_bytes": 64 * 1024 * 1024}
    return {"max_tile_bytes": 8 * 1024 * 1024, "tn_cap": 1024,
            "vmem_limit_bytes": 32 * 1024 * 1024}


def _pick_tn(mid, hidden, k, w_bytes, max_tile_bytes, tn_cap):
    """Widest lane-dense (multiple of 128) tile that divides BOTH `mid` and
    `hidden` (so tiles never straddle a layer boundary) and keeps one (k, tn)
    weight tile within the double-buffer VMEM budget."""
    cap = max(128, (max_tile_bytes // max(k * w_bytes, 1)) // 128 * 128)
    tn = min(mid, hidden, cap, tn_cap)
    tn = max(128, (tn // 128) * 128)
    while tn > 128 and (mid % tn != 0 or hidden % tn != 0):
        tn -= 128
    return tn


# ----------------------------------------------------------------------------
# Fused whole-module kernel
# ----------------------------------------------------------------------------
def _binary_layer_kernel(x_ref, w_ref, b_ref,            # inputs
                         mask_ref, bin_ref,               # outputs (pipelined)
                         m1_ref, q1_ref, m2_ref, q2_ref,  # VMEM-resident acts
                         *, tn, t_mid, lhs_bf16):
    """Grid step j computes one (M, tn) output-column tile of one layer.
    Layer order along the grid (t_mid tiles each, except the last):
      0: mask1   = relu(x  @ W1 + b1 + x)        -> m1 scratch
      1: binary1 = relu(x  @ W4 + b4 + x)        -> q1 scratch
      2: mask2   = relu(m1 @ W2 + b2 + m1)       -> m2 scratch
      3: binary2 = relu(q1 @ W5 + b5 + q1)       -> q2 scratch
      4: mask    =      m2 @ W3 + b3             -> mask output block
      5: binary  =      q2 @ W6 + b6             -> binary output block
    """
    j = pl.program_id(0)
    bias = b_ref[...].astype(jnp.float32)        # (1, tn), broadcast over rows

    def mm(lhs_f32):
        # Feed the MXU in the weight's own dtype (no in-kernel weight upcast);
        # for bf16 streaming only the tiny (M, K) LHS is cast.  Acc stays f32.
        lhs = lhs_f32.astype(jnp.bfloat16) if lhs_bf16 else lhs_f32
        return jnp.dot(lhs, w_ref[...], preferred_element_type=jnp.float32)

    def hidden_stage(in_ref, out_ref, layer_idx):
        # Column offset of this tile within the layer's (M, mid) activation.
        col = pl.multiple_of((j - layer_idx * t_mid) * tn, tn)
        res = in_ref[:, pl.ds(col, tn)]          # residual read from resident act
        y = jnp.maximum(mm(in_ref[...]) + bias + res, 0.0)
        out_ref[:, pl.ds(col, tn)] = y

    @pl.when(j < t_mid)
    def _():
        hidden_stage(x_ref, m1_ref, 0)

    @pl.when((j >= t_mid) & (j < 2 * t_mid))
    def _():
        hidden_stage(x_ref, q1_ref, 1)

    @pl.when((j >= 2 * t_mid) & (j < 3 * t_mid))
    def _():
        hidden_stage(m1_ref, m2_ref, 2)

    @pl.when((j >= 3 * t_mid) & (j < 4 * t_mid))
    def _():
        hidden_stage(q1_ref, q2_ref, 3)

    @pl.when((j >= 4 * t_mid) & (j < 5 * t_mid))
    def _():
        mask_ref[...] = (mm(m2_ref[...]) + bias).astype(mask_ref.dtype)

    @pl.when(j >= 5 * t_mid)
    def _():
        bin_ref[...] = (mm(q2_ref[...]) + bias).astype(bin_ref.dtype)


def binary_layer_forward(w_all, b_all, x):
    """Fused BinaryLayer forward.

    x:     (M, mid)           float32 activations
    w_all: (mid, 5*mid + hid) packed weights (f32 or bf16), layer order
                              [mask1, binary1, mask2, binary2, mask3, binary3]
    b_all: (1,   5*mid + hid) packed biases, float32
    returns (mask (M, mid) f32, binary (M, hid) f32)
    """
    M, mid = x.shape
    total_n = b_all.shape[1]
    hidden = total_n - 5 * mid
    assert w_all.shape == (mid, total_n)
    assert hidden > 0
    # f32-activation sublane tile is 8; revisit if activations become bf16 (16).
    assert M % 8 == 0, "batch rows must be a multiple of 8 (f32 sublane tile)"
    assert mid % 128 == 0 and hidden % 128 == 0

    tune = _device_tuning()
    w_bytes = jnp.dtype(w_all.dtype).itemsize
    tn = _pick_tn(mid, hidden, mid, w_bytes,
                  tune["max_tile_bytes"], tune["tn_cap"])
    t_mid = mid // tn
    t_hid = hidden // tn
    grid = (5 * t_mid + t_hid,)

    # Weight / bias tiles stream straight down the packed slab.
    w_spec = pl.BlockSpec((mid, tn), lambda j: (0, j))
    b_spec = pl.BlockSpec((1, tn), lambda j: (0, j))
    # x is fetched once and stays resident (constant block index).
    x_spec = pl.BlockSpec((M, mid), lambda j: (0, 0))

    # Output block indices: clamp outside the owning layer's range so the block
    # index only changes while that layer is running (each block is written
    # exactly once, right before its writeback).
    def mask_map(j):
        return (0, jnp.minimum(jnp.maximum(j - 4 * t_mid, 0), t_mid - 1))

    def bin_map(j):
        return (0, jnp.minimum(jnp.maximum(j - 5 * t_mid, 0), t_hid - 1))

    kernel = functools.partial(
        _binary_layer_kernel, tn=tn, t_mid=t_mid,
        lhs_bf16=(w_all.dtype == jnp.bfloat16))

    cost = pl.CostEstimate(
        flops=2 * M * mid * total_n,
        transcendentals=0,
        bytes_accessed=(mid * total_n * w_bytes          # weights (dominant)
                        + total_n * 4                    # biases
                        + M * mid * 4                    # x
                        + M * (mid + hidden) * 4))       # outputs

    mask, binary = pl.pallas_call(
        kernel,
        out_shape=(jax.ShapeDtypeStruct((M, mid), jnp.float32),
                   jax.ShapeDtypeStruct((M, hidden), jnp.float32)),
        grid_spec=pltpu.PrefetchScalarGridSpec(
            num_scalar_prefetch=0,
            grid=grid,
            in_specs=[x_spec, w_spec, b_spec],
            out_specs=(pl.BlockSpec((M, tn), mask_map),
                       pl.BlockSpec((M, tn), bin_map)),
            scratch_shapes=[pltpu.VMEM((M, mid), jnp.float32)
                            for _ in range(4)],
        ),
        compiler_params=pltpu.CompilerParams(
            # Layer k+1 consumes scratch written by layer k: must run
            # sequentially on one core -> "arbitrary", never "parallel".
            dimension_semantics=("arbitrary",),
            vmem_limit_bytes=tune["vmem_limit_bytes"]),
        cost_estimate=cost,
    )(x, w_all, b_all)
    return mask, binary


# ----------------------------------------------------------------------------
# Parameters
# ----------------------------------------------------------------------------
def init_binary_layer_params(key, mid_embedding_size, hidden_size):
    """Deterministic init mimicking nn.Linear (uniform +-1/sqrt(fan_in)).
    Weights are stored already transposed to (in, out)."""
    dims = [
        (mid_embedding_size, mid_embedding_size),  # to_mask1
        (mid_embedding_size, mid_embedding_size),  # to_mask2
        (mid_embedding_size, mid_embedding_size),  # to_mask3
        (mid_embedding_size, mid_embedding_size),  # to_binary1
        (mid_embedding_size, mid_embedding_size),  # to_binary2
        (mid_embedding_size, hidden_size),         # to_binary3
    ]
    params = []
    keys = jax.random.split(key, 2 * len(dims))
    for idx, (fan_in, fan_out) in enumerate(dims):
        bound = 1.0 / jnp.sqrt(float(fan_in))
        w_t = jax.random.uniform(keys[2 * idx], (fan_in, fan_out),
                                 jnp.float32, -bound, bound)
        b = jax.random.uniform(keys[2 * idx + 1], (1, fan_out),
                               jnp.float32, -bound, bound)
        params.append((w_t, b))
    return params


def prepare_binary_layer_params(params, weight_dtype=jnp.bfloat16):
    """One-time weight prep (outside the hot path): pack the six weights /
    biases column-wise in the kernel's layer order.  bf16 weight streaming is
    the default (halves HBM weight traffic — the dominant cost, biggest single
    lever on v5e); pass jnp.float32 for exact original-module semantics."""
    (w1, b1), (w2, b2), (w3, b3), (w4, b4), (w5, b5), (w6, b6) = params
    order = [(w1, b1), (w4, b4), (w2, b2), (w5, b5), (w3, b3), (w6, b6)]
    w_all = jnp.concatenate([w.astype(weight_dtype) for w, _ in order], axis=1)
    b_all = jnp.concatenate([b.astype(jnp.float32) for _, b in order], axis=1)
    return w_all, b_all


# ----------------------------------------------------------------------------
# Pure-JAX references
# ----------------------------------------------------------------------------
def binary_layer_reference(params, x):
    """Exact original (f32) semantics."""
    (w1, b1), (w2, b2), (w3, b3), (w4, b4), (w5, b5), (w6, b6) = params
    relu = jax.nn.relu
    mask = relu(x @ w1 + b1 + x)
    mask = relu(mask @ w2 + b2 + mask)
    mask = mask @ w3 + b3
    binary = relu(x @ w4 + b4 + x)
    binary = relu(binary @ w5 + b5 + binary)
    binary = binary @ w6 + b6
    return mask, binary


def binary_layer_reference_bf16(params, x):
    """Mirror of the kernel's bf16 weight-streaming math: bf16 LHS x bf16 W on
    the MXU with f32 accumulation; bias / residual / ReLU stay f32."""
    def lin(a, w, b):
        return jnp.dot(a.astype(jnp.bfloat16), w.astype(jnp.bfloat16),
                       preferred_element_type=jnp.float32) + b
    (w1, b1), (w2, b2), (w3, b3), (w4, b4), (w5, b5), (w6, b6) = params
    relu = jax.nn.relu
    mask = relu(lin(x, w1, b1) + x)
    mask = relu(lin(mask, w2, b2) + mask)
    mask = lin(mask, w3, b3)
    binary = relu(lin(x, w4, b4) + x)
    binary = relu(lin(binary, w5, b5) + binary)
    binary = lin(binary, w6, b6)
    return mask, binary


if __name__ == "__main__":
    # Small shapes consistent with the module (original: mid=2048, hidden=16384).
    batch = 8
    mid_embedding_size = 256
    hidden_size = 512

    key = jax.random.PRNGKey(0)
    kp, kx = jax.random.split(key)
    params = init_binary_layer_params(kp, mid_embedding_size, hidden_size)
    x = jax.random.normal(kx, (batch, mid_embedding_size), jnp.float32)

    fwd = jax.jit(binary_layer_forward)

    # --- exact f32 path (original module semantics) --------------------------
    w_f32, b_f32 = prepare_binary_layer_params(params, jnp.float32)
    mask, binary = fwd(w_f32, b_f32, x)
    jax.block_until_ready((mask, binary))
    mask_ref, binary_ref = binary_layer_reference(params, x)
    assert mask.shape == (batch, mid_embedding_size)
    assert binary.shape == (batch, hidden_size)
    assert jnp.allclose(mask, mask_ref, atol=5e-4, rtol=5e-4)
    assert jnp.allclose(binary, binary_ref, atol=5e-4, rtol=5e-4)

    # --- bf16 weight streaming (default: halves HBM weight bytes) ------------
    w_bf16, b_bf16 = prepare_binary_layer_params(params, jnp.bfloat16)
    mask_q, binary_q = fwd(w_bf16, b_bf16, x)
    jax.block_until_ready((mask_q, binary_q))
    mask_qref, binary_qref = binary_layer_reference_bf16(params, x)
    assert jnp.allclose(mask_q, mask_qref, atol=5e-3, rtol=5e-3)
    assert jnp.allclose(binary_q, binary_qref, atol=5e-3, rtol=5e-3)

    print("KERNEL_OK")
</pallas_src>

<mosaic_0001>
module attributes {stable_mosaic.version = 11 : i64} {
  func.func @_binary_layer_kernel(%arg0: i32, %arg1: memref<8x256xf32, #tpu.memory_space<vmem>>, %arg2: memref<256x256xf32, #tpu.memory_space<vmem>>, %arg3: memref<1x256xf32, #tpu.memory_space<vmem>>, %arg4: memref<8x256xf32, #tpu.memory_space<vmem>>, %arg5: memref<8x256xf32, #tpu.memory_space<vmem>>, %arg6: memref<8x256xf32, #tpu.memory_space<vmem>>, %arg7: memref<8x256xf32, #tpu.memory_space<vmem>>, %arg8: memref<8x256xf32, #tpu.memory_space<vmem>>, %arg9: memref<8x256xf32, #tpu.memory_space<vmem>>) attributes {dimension_semantics = [#tpu.dimension_semantics<arbitrary>], iteration_bounds = array<i64: 7>, scalar_prefetch = 0 : i64, scratch_operands = 4 : i64, tpu.core_type = #tpu.core_type<tc>, window_params = [{pipeline_mode = #tpu.pipeline_mode<synchronous>, transform_indices = @transform_0, window_bounds = array<i64: 8, 256>}, {transform_indices = @transform_1, window_bounds = array<i64: 256, 256>}, {transform_indices = @transform_2, window_bounds = array<i64: 1, 256>}, {transform_indices = @transform_3, window_bounds = array<i64: 8, 256>}, {transform_indices = @transform_4, window_bounds = array<i64: 8, 256>}]} {
    %c0 = arith.constant 0 : index
    %c0_0 = arith.constant 0 : index
    %0 = vector.load %arg3[%c0, %c0_0] : memref<1x256xf32, #tpu.memory_space<vmem>>, vector<1x256xf32>
    %c1_i32 = arith.constant 1 : i32
    %1 = arith.cmpi slt, %arg0, %c1_i32 : i32
    %2 = arith.extui %1 : i1 to i32
    %c0_i32 = arith.constant 0 : i32
    %3 = arith.cmpi ne, %2, %c0_i32 : i32
    scf.if %3 {
      %c0_i32_11 = arith.constant 0 : i32
      %27 = arith.subi %arg0, %c0_i32_11 : i32
      %c256_i32 = arith.constant 256 : i32
      %28 = arith.muli %27, %c256_i32 : i32
      %29 = tpu.assume_multiple %28, 256 : i32
      %c0_12 = arith.constant 0 : index
      %30 = arith.index_cast %29 : i32 to index
      %31 = vector.load %arg1[%c0_12, %30] : memref<8x256xf32, #tpu.memory_space<vmem>>, vector<8x256xf32>
      %c0_13 = arith.constant 0 : index
      %c0_14 = arith.constant 0 : index
      %32 = vector.load %arg1[%c0_13, %c0_14] : memref<8x256xf32, #tpu.memory_space<vmem>>, vector<8x256xf32>
      %c0_15 = arith.constant 0 : index
      %c0_16 = arith.constant 0 : index
      %33 = vector.load %arg2[%c0_15, %c0_16] : memref<256x256xf32, #tpu.memory_space<vmem>>, vector<256x256xf32>
      %cst = arith.constant dense<0.000000e+00> : vector<8x256xf32>
      %34 = tpu.matmul %32, %33, %cst {dimension_numbers = #tpu.dot_dimension_numbers<[1], [0], [0], [1], [0, 0, 1, 1], [], []>} : vector<8x256xf32>, vector<256x256xf32>, vector<8x256xf32> -> vector<8x256xf32>
      %35 = vector.broadcast %0 : vector<1x256xf32> to vector<8x256xf32>
      %36 = arith.addf %34, %35 : vector<8x256xf32>
      %37 = arith.addf %36, %31 : vector<8x256xf32>
      %cst_17 = arith.constant 0.000000e+00 : f32
      %38 = vector.broadcast %cst_17 : f32 to vector<8x256xf32>
      %39 = arith.maximumf %37, %38 : vector<8x256xf32>
      %c0_18 = arith.constant 0 : index
      %40 = arith.index_cast %29 : i32 to index
      %41 = vector.load %arg6[%c0_18, %40] : memref<8x256xf32, #tpu.memory_space<vmem>>, vector<8x256xf32>
      tpu.vector_store %arg6[%c0_18, %40], %39 {strides = array<i32>} : memref<8x256xf32, #tpu.memory_space<vmem>>, vector<8x256xf32>,
    } else {
    }
    %c1_i32_1 = arith.constant 1 : i32
    %4 = arith.cmpi sge, %arg0, %c1_i32_1 : i32
    %c2_i32 = arith.constant 2 : i32
    %5 = arith.cmpi slt, %arg0, %c2_i32 : i32
    %6 = arith.andi %4, %5 : i1
    %7 = arith.extui %6 : i1 to i32
    %c0_i32_2 = arith.constant 0 : i32
    %8 = arith.cmpi ne, %7, %c0_i32_2 : i32
    scf.if %8 {
      %c1_i32_11 = arith.constant 1 : i32
      %27 = arith.subi %arg0, %c1_i32_11 : i32
      %c256_i32 = arith.constant 256 : i32
      %28 = arith.muli %27, %c256_i32 : i32
      %29 = tpu.assume_multiple %28, 256 : i32
      %c0_12 = arith.constant 0 : index
      %30 = arith.index_cast %29 : i32 to index
      %31 = vector.load %arg1[%c0_12, %30] : memref<8x256xf32, #tpu.memory_space<vmem>>, vector<8x256xf32>
      %c0_13 = arith.constant 0 : index
      %c0_14 = arith.constant 0 : index
      %32 = vector.load %arg1[%c0_13, %c0_14] : memref<8x256xf32, #tpu.memory_space<vmem>>, vector<8x256xf32>
      %c0_15 = arith.constant 0 : index
      %c0_16 = arith.constant 0 : index
      %33 = vector.load %arg2[%c0_15, %c0_16] : memref<256x256xf32, #tpu.memory_space<vmem>>, vector<256x256xf32>
      %cst = arith.constant dense<0.000000e+00> : vector<8x256xf32>
      %34 = tpu.matmul %32, %33, %cst {dimension_numbers = #tpu.dot_dimension_numbers<[1], [0], [0], [1], [0, 0, 1, 1], [], []>} : vector<8x256xf32>, vector<256x256xf32>, vector<8x256xf32> -> vector<8x256xf32>
      %35 = vector.broadcast %0 : vector<1x256xf32> to vector<8x256xf32>
      %36 = arith.addf %34, %35 : vector<8x256xf32>
      %37 = arith.addf %36, %31 : vector<8x256xf32>
      %cst_17 = arith.constant 0.000000e+00 : f32
      %38 = vector.broadcast %cst_17 : f32 to vector<8x256xf32>
      %39 = arith.maximumf %37, %38 : vector<8x256xf32>
      %c0_18 = arith.constant 0 : index
      %40 = arith.index_cast %29 : i32 to index
      %41 = vector.load %arg7[%c0_18, %40] : memref<8x256xf32, #tpu.memory_space<vmem>>, vector<8x256xf32>
      tpu.vector_store %arg7[%c0_18, %40], %39 {strides = array<i32>} : memref<8x256xf32, #tpu.memory_space<vmem>>, vector<8x256xf32>,
    } else {
    }
    %c2_i32_3 = arith.constant 2 : i32
    %9 = arith.cmpi sge, %arg0, %c2_i32_3 : i32
    %c3_i32 = arith.constant 3 : i32
    %10 = arith.cmpi slt, %arg0, %c3_i32 : i32
    %11 = arith.andi %9, %10 : i1
    %12 = arith.extui %11 : i1 to i32
    %c0_i32_4 = arith.constant 0 : i32
    %13 = arith.cmpi ne, %12, %c0_i32_4 : i32
    scf.if %13 {
      %c2_i32_11 = arith.constant 2 : i32
      %27 = arith.subi %arg0, %c2_i32_11 : i32
      %c256_i32 = arith.constant 256 : i32
      %28 = arith.muli %27, %c256_i32 : i32
      %29 = tpu.assume_multiple %28, 256 : i32
      %c0_12 = arith.constant 0 : index
      %30 = arith.index_cast %29 : i32 to index
      %31 = vector.load %arg6[%c0_12, %30] : memref<8x256xf32, #tpu.memory_space<vmem>>, vector<8x256xf32>
      %c0_13 = arith.constant 0 : index
      %c0_14 = arith.constant 0 : index
      %32 = vector.load %arg6[%c0_13, %c0_14] : memref<8x256xf32, #tpu.memory_space<vmem>>, vector<8x256xf32>
      %c0_15 = arith.constant 0 : index
      %c0_16 = arith.constant 0 : index
      %33 = vector.load %arg2[%c0_15, %c0_16] : memref<256x256xf32, #tpu.memory_space<vmem>>, vector<256x256xf32>
      %cst = arith.constant dense<0.000000e+00> : vector<8x256xf32>
      %34 = tpu.matmul %32, %33, %cst {dimension_numbers = #tpu.dot_dimension_numbers<[1], [0], [0], [1], [0, 0, 1, 1], [], []>} : vector<8x256xf32>, vector<256x256xf32>, vector<8x256xf32> -> vector<8x256xf32>
      %35 = vector.broadcast %0 : vector<1x256xf32> to vector<8x256xf32>
      %36 = arith.addf %34, %35 : vector<8x256xf32>
      %37 = arith.addf %36, %31 : vector<8x256xf32>
      %cst_17 = arith.constant 0.000000e+00 : f32
      %38 = vector.broadcast %cst_17 : f32 to vector<8x256xf32>
      %39 = arith.maximumf %37, %38 : vector<8x256xf32>
      %c0_18 = arith.constant 0 : index
      %40 = arith.index_cast %29 : i32 to index
      %41 = vector.load %arg8[%c0_18, %40] : memref<8x256xf32, #tpu.memory_space<vmem>>, vector<8x256xf32>
      tpu.vector_store %arg8[%c0_18, %40], %39 {strides = array<i32>} : memref<8x256xf32, #tpu.memory_space<vmem>>, vector<8x256xf32>,
    } else {
    }
    %c3_i32_5 = arith.constant 3 : i32
    %14 = arith.cmpi sge, %arg0, %c3_i32_5 : i32
    %c4_i32 = arith.constant 4 : i32
    %15 = arith.cmpi slt, %arg0, %c4_i32 : i32
    %16 = arith.andi %14, %15 : i1
    %17 = arith.extui %16 : i1 to i32
    %c0_i32_6 = arith.constant 0 : i32
    %18 = arith.cmpi ne, %17, %c0_i32_6 : i32
    scf.if %18 {
      %c3_i32_11 = arith.constant 3 : i32
      %27 = arith.subi %arg0, %c3_i32_11 : i32
      %c256_i32 = arith.constant 256 : i32
      %28 = arith.muli %27, %c256_i32 : i32
      %29 = tpu.assume_multiple %28, 256 : i32
      %c0_12 = arith.constant 0 : index
      %30 = arith.index_cast %29 : i32 to index
      %31 = vector.load %arg7[%c0_12, %30] : memref<8x256xf32, #tpu.memory_space<vmem>>, vector<8x256xf32>
      %c0_13 = arith.constant 0 : index
      %c0_14 = arith.constant 0 : index
      %32 = vector.load %arg7[%c0_13, %c0_14] : memref<8x256xf32, #tpu.memory_space<vmem>>, vector<8x256xf32>
      %c0_15 = arith.constant 0 : index
      %c0_16 = arith.constant 0 : index
      %33 = vector.load %arg2[%c0_15, %c0_16] : memref<256x256xf32, #tpu.memory_space<vmem>>, vector<256x256xf32>
      %cst = arith.constant dense<0.000000e+00> : vector<8x256xf32>
      %34 = tpu.matmul %32, %33, %cst {dimension_numbers = #tpu.dot_dimension_numbers<[1], [0], [0], [1], [0, 0, 1, 1], [], []>} : vector<8x256xf32>, vector<256x256xf32>, vector<8x256xf32> -> vector<8x256xf32>
      %35 = vector.broadcast %0 : vector<1x256xf32> to vector<8x256xf32>
      %36 = arith.addf %34, %35 : vector<8x256xf32>
      %37 = arith.addf %36, %31 : vector<8x256xf32>
      %cst_17 = arith.constant 0.000000e+00 : f32
      %38 = vector.broadcast %cst_17 : f32 to vector<8x256xf32>
      %39 = arith.maximumf %37, %38 : vector<8x256xf32>
      %c0_18 = arith.constant 0 : index
      %40 = arith.index_cast %29 : i32 to index
      %41 = vector.load %arg9[%c0_18, %40] : memref<8x256xf32, #tpu.memory_space<vmem>>, vector<8x256xf32>
      tpu.vector_store %arg9[%c0_18, %40], %39 {strides = array<i32>} : memref<8x256xf32, #tpu.memory_space<vmem>>, vector<8x256xf32>,
    } else {
    }
    %c4_i32_7 = arith.constant 4 : i32
    %19 = arith.cmpi sge, %arg0, %c4_i32_7 : i32
    %c5_i32 = arith.constant 5 : i32
    %20 = arith.cmpi slt, %arg0, %c5_i32 : i32
    %21 = arith.andi %19, %20 : i1
    %22 = arith.extui %21 : i1 to i32
    %c0_i32_8 = arith.constant 0 : i32
    %23 = arith.cmpi ne, %22, %c0_i32_8 : i32
    scf.if %23 {
      %c0_11 = arith.constant 0 : index
      %c0_12 = arith.constant 0 : index
      %27 = vector.load %arg8[%c0_11, %c0_12] : memref<8x256xf32, #tpu.memory_space<vmem>>, vector<8x256xf32>
      %c0_13 = arith.constant 0 : index
      %c0_14 = arith.constant 0 : index
      %28 = vector.load %arg2[%c0_13, %c0_14] : memref<256x256xf32, #tpu.memory_space<vmem>>, vector<256x256xf32>
      %cst = arith.constant dense<0.000000e+00> : vector<8x256xf32>
      %29 = tpu.matmul %27, %28, %cst {dimension_numbers = #tpu.dot_dimension_numbers<[1], [0], [0], [1], [0, 0, 1, 1], [], []>} : vector<8x256xf32>, vector<256x256xf32>, vector<8x256xf32> -> vector<8x256xf32>
      %30 = vector.broadcast %0 : vector<1x256xf32> to vector<8x256xf32>
      %31 = arith.addf %29, %30 : vector<8x256xf32>
      %c0_15 = arith.constant 0 : index
      %c0_16 = arith.constant 0 : index
      %32 = vector.load %arg4[%c0_15, %c0_16] : memref<8x256xf32, #tpu.memory_space<vmem>>, vector<8x256xf32>
      tpu.vector_store %arg4[%c0_15, %c0_16], %31 {strides = array<i32>} : memref<8x256xf32, #tpu.memory_space<vmem>>, vector<8x256xf32>,
    } else {
    }
    %c5_i32_9 = arith.constant 5 : i32
    %24 = arith.cmpi sge, %arg0, %c5_i32_9 : i32
    %25 = arith.extui %24 : i1 to i32
    %c0_i32_10 = arith.constant 0 : i32
    %26 = arith.cmpi ne, %25, %c0_i32_10 : i32
    scf.if %26 {
      %c0_11 = arith.constant 0 : index
      %c0_12 = arith.constant 0 : index
      %27 = vector.load %arg9[%c0_11, %c0_12] : memref<8x256xf32, #tpu.memory_space<vmem>>, vector<8x256xf32>
      %c0_13 = arith.constant 0 : index
      %c0_14 = arith.constant 0 : index
      %28 = vector.load %arg2[%c0_13, %c0_14] : memref<256x256xf32, #tpu.memory_space<vmem>>, vector<256x256xf32>
      %cst = arith.constant dense<0.000000e+00> : vector<8x256xf32>
      %29 = tpu.matmul %27, %28, %cst {dimension_numbers = #tpu.dot_dimension_numbers<[1], [0], [0], [1], [0, 0, 1, 1], [], []>} : vector<8x256xf32>, vector<256x256xf32>, vector<8x256xf32> -> vector<8x256xf32>
      %30 = vector.broadcast %0 : vector<1x256xf32> to vector<8x256xf32>
      %31 = arith.addf %29, %30 : vector<8x256xf32>
      %c0_15 = arith.constant 0 : index
      %c0_16 = arith.constant 0 : index
      %32 = vector.load %arg5[%c0_15, %c0_16] : memref<8x256xf32, #tpu.memory_space<vmem>>, vector<8x256xf32>
      tpu.vector_store %arg5[%c0_15, %c0_16], %31 {strides = array<i32>} : memref<8x256xf32, #tpu.memory_space<vmem>>, vector<8x256xf32>,
    } else {
    }
    return
  }
  func.func @transform_0(%arg0: i32) -> (i32, i32) {
    %c0_i32 = arith.constant 0 : i32
    %c0_i32_0 = arith.constant 0 : i32
    %c0_i32_1 = arith.constant 0 : i32
    return %c0_i32, %c0_i32_0 : i32, i32
  }
  func.func @transform_1(%arg0: i32) -> (i32, i32) {
    %c0_i32 = arith.constant 0 : i32
    %c0_i32_0 = arith.constant 0 : i32
    return %c0_i32, %arg0 : i32, i32
  }
  func.func @transform_2(%arg0: i32) -> (i32, i32) {
    %c0_i32 = arith.constant 0 : i32
    %c0_i32_0 = arith.constant 0 : i32
    return %c0_i32, %arg0 : i32, i32
  }
  func.func @transform_3(%arg0: i32) -> (i32, i32) {
    %c4_i32 = arith.constant 4 : i32
    %0 = arith.subi %arg0, %c4_i32 : i32
    %c0_i32 = arith.constant 0 : i32
    %1 = arith.maxsi %0, %c0_i32 : i32
    %c0_i32_0 = arith.constant 0 : i32
    %2 = arith.minsi %1, %c0_i32_0 : i32
    %c0_i32_1 = arith.constant 0 : i32
    %c0_i32_2 = arith.constant 0 : i32
    return %c0_i32_1, %2 : i32, i32
  }
  func.func @transform_4(%arg0: i32) -> (i32, i32) {
    %c5_i32 = arith.constant 5 : i32
    %0 = arith.subi %arg0, %c5_i32 : i32
    %c0_i32 = arith.constant 0 : i32
    %1 = arith.maxsi %0, %c0_i32 : i32
    %c1_i32 = arith.constant 1 : i32
    %2 = arith.minsi %1, %c1_i32 : i32
    %c0_i32_0 = arith.constant 0 : i32
    %c0_i32_1 = arith.constant 0 : i32
    return %c0_i32_0, %2 : i32, i32
  }
}

</mosaic_0001>

<bundles_post_ra>
// kernel: binary_layer_forward.1
= control target key start
LH: loop header
LB: loop body
LE: loop exit
PB: predicated region body
PF: predicated region fallthrough
CT: control target
= control target key end

     0   :  { %s3010_s0 = inlined_call_operand.hbm [shape: f32[8,256], index: 0, kind: input, shape index: {}]   ;;  %s3011_s1 = inlined_call_operand.hbm [shape: f32[256,1792], index: 1, kind: input, shape index: {}]   ;;  %s3012_s2 = inlined_call_operand.hbm [shape: f32[1,1792], index: 2, kind: input, shape index: {}]   ;;  %s3013_s3 = inlined_call_operand.hbm [shape: f32[8,256], index: 3, kind: output, shape index: {0}]   ;;  %s3014_s4 = inlined_call_operand.hbm [shape: f32[8,512], index: 4, kind: output, shape index: {1}]  }
   0x1   :  { %3026 = sst [smem:[#allocation23_spill]] %s3011_s1 }
   0x2   :  { %10 = vsyncpa [#allocation7], 0 }
   0x3   :  { %11 = vsyncpa [#allocation10], 0 }
   0x4   :  { %13 = vsyncpa [#allocation10 + $0x1], 0 }
   0x5   :  { %14 = vsyncpa [#allocation8], 0 }
   0x6   :  { %16 = vsyncpa [#allocation8 + $0x1], 0 }
   0x7   :  { %17 = vsyncpa [#allocation14], 0 }
   0x8   :  { %19 = vsyncpa [#allocation14 + $0x1], 0  ;;  %s2303_s15 = smov 0   ;;  %s2305_s16 = smov 0  }
   0x9   :  { %s2307_s17 = smov 0   ;;  %s2309_s18 = smov 0  }
   0xa   :  { %s2311_s19 = smov 0   ;;  %s2313_s20 = smov 0  }
   0xb   :  { %s2315_s21 = smov 0  }
   0xc LB: > { %3027 = sst [smem:[#allocation19_spill]] %s2252_s17  ;;  %s2339_s22 = sadd.s32 1, %s2268_s21   ;;  %s2268_s21 = sphi %s2315_s21, %s3060_s21   ;;  %s2264_s20 = sphi %s2313_s20, %s3055_s20   ;;  %s2260_s19 = sphi %s2311_s19, %s3059_s19   ;;  %s2256_s18 = sphi %s2309_s18, %s3058_s18   ;;  %s2252_s17 = sphi %s2307_s17, %s3053_s17   ;;  %s2248_s16 = sphi %s2305_s16, %s3057_s16   ;;  %s2244_s15 = sphi %s2303_s15, %s3056_s15  }
   0xd   : > { %3028 = sst [smem:[#allocation20_spill]] %s2264_s20  ;;  %s53_s23 = sadd.s32 1, %s2264_s20 }
   0xe   : > { %s50_s24 = ssub.s32 %s2268_s21, %s2339_s22  ;;  %p60_p0 = scmp.ne.s32.totalorder %s2264_s20, %s2260_s19 }
   0xf   : > { %p51_p1 = scmp.eq.s32.totalorder %s50_s24, 0  ;;  %p61_p2 = scmp.eq.s32.totalorder %s2268_s21, 0 }
  0x10   : > { %p1992_p3 = scmp.lt.s32.totalorder %s2268_s21, 7  ;;  %s199_s26 = sand.u32 1, %s2268_s21  }
  0x11   : > { %s2349_s25 = scalar_select %p51_p1, %s2264_s20, %s53_s23  }
  0x12   : > { %p62_p4 = por %p61_p2, %p60_p0  ;;  %s201_s27 = sand.u32 1, %s2264_s20  }
  0x13   : > { %3029 = sst [smem:[#allocation21_spill]] %s2349_s25  ;;  %s1519_s28 = sshll.u32 %s201_s27, 9 }
  0x14   : > { %s1572_s29 = sshll.u32 %s2268_s21, 8  ;;  %s3030_s1 = sld [smem:[#allocation23_spill]] }
  0x15   : > { %s203_s7 = scalar_lea.vmem [#allocation9], %s1519_s28  ;;  %p2361_p5 = pnand %p1992_p3, %p62_p4 }
  0x16   : > { %s210_s8 = sshll.u32 %s203_s7, 4  ;;  %s2367_s10 = scalar_lea.sflag [#allocation10], %s199_s26  ;;  %s2365_s8 = int_to_ptr.vmem [resolvable:$true] %s210_s8 }
  0x17   : > { %s3031_s9 = scalar_select %p2361_p5, 1, 0 }
  0x18   : > { %p3015_p7 = pneg %p2361_p5 }
  0x1a   : > { %s2359_s6 = scalar_lea.hbm %s3030_s1, %s1572_s29  ;;  %s2061_s14 = scalar_lea.hbm %s3030_s1, 57344 }
  0x1b   : > { %s2056_s11 = scalar_lea.hbm %s2359_s6, 8192  ;;  %p2062_p10 = scmp.lt.u32.totalorder %s2359_s6, %s3030_s1 }
  0x1c   : > { %p2057_p6 = scmp.ne.s32.totalorder %s2359_s6, %s2056_s11  ;;  %p2063_p11 = scmp.lt.u32.totalorder %s2061_s14, %s2056_s11 }
  0x1d   : > { %p2065_p13 = scmp.lt.u32.totalorder %s2056_s11, %s2359_s6 }
  0x1e   : > { %p2059_p8 = pnand %p3015_p7, %p2057_p6  ;;  %p2064_p12 = por %p2063_p11, %p2062_p10 }
  0x20   : > { %p2060_p9 = pneg %p2059_p8  ;;  %p2066_p0 = por %p2065_p13, %p2064_p12 }
  0x22   : > { %p2067_p1 = pnand %p2066_p0, %p2060_p9 }
  0x24   : > { %2070 = shalt.err (!%p2067_p1)
}
  0x25   : > { %s2071_s26 = scalar_lea.vmem %s2365_s8, 8192  ;;  %s2270_s28 = smov [#allocation9]  }
  0x26   : > { %p2072_p2 = scmp.ne.s32.totalorder %s2365_s8, %s2071_s26  ;;  %s2076_s29 = sshll.u32 %s2270_s28, 4  ;;  %s2077_s29 = int_to_ptr.vmem [resolvable:$false] %s2076_s29 }
  0x27   : > { %s2078_s30 = scalar_lea.vmem %s2077_s29, 16384  ;;  %p2079_p6 = scmp.lt.s32.totalorder %s2365_s8, %s2077_s29 }
  0x28   : > { %p2074_p3 = pnand %p2072_p2, %p3015_p7  ;;  %p2080_p8 = scmp.lt.s32.totalorder %s2078_s30, %s2071_s26 }
  0x2a   : > { %p2075_p4 = pneg %p2074_p3  ;;  %p2081_p10 = por %p2080_p8, %p2079_p6 }
  0x2c   : > { %p2082_p11 = pnand %p2081_p10, %p2075_p4 }
  0x2e   : > { %2085 = shalt.err (!%p2082_p11)
}
  0x2f   : > { %s2271_s5 = smov 1792   ;;  %s2272_s7 = smov 256  }
  0x30   : > { %s2273_s11 = smov 16   ;;  %s2396_s12 = sadd.s32 4294967295, %s2268_s21  }
  0x31   : > { %1980 = dma.hbm_to_vmem [thread:$0]  (!%p2361_p5), %s2359_s6, 8192, %s2365_s8, %s2367_s10, %s2271_s5, %s2272_s7, %s2273_s11  }
  0x32   : > { %s1491_s13 = sadd.s32 4294967294, %s2268_s21   ;;  %p66_p9 = scmp.ne.s32.totalorder %s2260_s19, %s2256_s18 }
  0x33   : > { %p3019_p12 = scmp.eq.s32.totalorder %s2396_s12, 0  ;;  %p3018_p13 = scmp.eq.s32.totalorder %s2396_s12, 6 }
  0x34   : > { %p2403_p0 = scmp.eq.s32.totalorder %s1491_s13, 6  ;;  %s1504_s6 = sadd.s32 4294967291, %s2268_s21 }
  0x35   : > { %p2410_p1 = por %p3019_p12, %p66_p9  ;;  %p139_p2 = scmp.gt.s32.totalorder %s1504_s6, 0 }
  0x36   : > { %s3032_s14 = scalar_select %p2403_p0, 1, 0 }
  0x37   : > { %s3033_s8 = scalar_select %p2410_p1, 1, 0 }
  0x38   : > { %p1505_p3 = scmp.lt.s32.totalorder %s1504_s6, 1  ;;  %s1510_s18 = sadd.s32 4294967291, %s2339_s22 }
  0x39   : > { %s3062_s6 = smov (!%p139_p2, %s1504_s6), 0  ;;  %p144_p4 = scmp.gt.s32.totalorder %s1510_s18, 0 }
  0x3a   : > { %p1511_p6 = scmp.lt.s32.totalorder %s1510_s18, 1  ;;  %s3064_s6 = smov (!%p1505_p3, %s3062_s6), 1 }
  0x3b   : > { %s3066_s18 = smov (!%p144_p4, %s1510_s18), 0  ;;  %s151_s23 = sadd.s32 1, %s2252_s17 }
  0x3c   : > { %p161_p8 = scmp.ne.s32.totalorder %s2252_s17, %s2248_s16  ;;  %s3068_s18 = smov (!%p1511_p6, %s3066_s18), 1 }
  0x3d   : > { %p167_p11 = scmp.ne.s32.totalorder %s2248_s16, %s2244_s15  ;;  %s148_s26 = ssub.s32 %s3064_s6, %s3068_s18 }
  0x3e   : > { %p2420_p10 = por %p161_p8, %p3018_p13  ;;  %p1516_p9 = scmp.ge.s32.totalorder %s2268_s21, 1 }
  0x3f   : > { %p149_p7 = scmp.eq.s32.totalorder %s148_s26, 0  ;;  %p2429_p2 = por %p167_p11, %p2403_p0 }
  0x40   : > { %s3034_s24 = scalar_select %p2420_p10, 1, 0 }
  0x41   : > { %s3035_s28 = scalar_select %p2429_p2, 1, 0 }
  0x42   : > { %p175_p3 = scmp.lt.s32.totalorder %s2268_s21, 8  ;;  %s2274_s5 = smov [#allocation6]  }
  0x43   : > { %s2435_s29 = scalar_select %p149_p7, %s2252_s17, %s151_s23  }
  0x44   : > { %p2437_p4 = pnand %p1516_p9, %p175_p3  ;;  %s188_s7 = sshll.u32 %s2274_s5, 4  ;;  %s189_s7 = int_to_ptr.vmem [resolvable:$true] %s188_s7 }
  0x45   : > { %3036 = sst [smem:[#allocation22_spill]] %s2435_s29  ;;  %s1522_s11 = sshll.u32 %s201_s27, 1 }
  0x46   : > { %s3037_s30 = scalar_select %p2437_p4, 1, 0 }
  0x47   : > { %p1973_p6 = pneg %p2437_p4  ;;  %s1573_s13 = sshll.u32 %s2268_s21, 5 }
  0x48   : > { %s2455_s26 = scalar_lea.hbm %s3012_s2, %s1573_s13  ;;  %s224_s1 = scalar_lea.vmem [#allocation11], %s1522_s11 }
  0x49   : > { %p2448_p8 = pnand %p1973_p6, %p3019_p12  ;;  %s232_s25 = sshll.u32 %s224_s1, 4  ;;  %s2457_s25 = int_to_ptr.vmem [resolvable:$true] %s232_s25 }
  0x4a   : > { %s2086_s20 = scalar_lea.hbm %s3010_s0, 256 }
  0x4b   : > { %p2087_p7 = scmp.ne.s32.totalorder %s3010_s0, %s2086_s20  ;;  %p2088_p11 = pneg %p2448_p8 }
  0x4c   : > { %p2093_p6 = scmp.lt.u32.totalorder %s2086_s20, %s3010_s0 }
  0x4d   : > { %p2089_p9 = pnand %p2088_p11, %p2087_p7 }
  0x4f   : > { %p2090_p3 = pneg %p2089_p9 }
  0x51   : > { %p2095_p13 = pnand %p2093_p6, %p2090_p3 }
  0x53   : > { %2098 = shalt.err (!%p2095_p13)
}
  0x54   : > { %s2099_s1 = scalar_lea.vmem %s189_s7, 256  ;;  %p2107_p10 = scmp.lt.s32.totalorder %s189_s7, %s189_s7 }
  0x55   : > { %p2100_p12 = scmp.ne.s32.totalorder %s189_s7, %s2099_s1  ;;  %p2108_p1 = scmp.lt.s32.totalorder %s2099_s1, %s2099_s1 }
  0x57   : > { %p2102_p2 = pnand %p2100_p12, %p2088_p11  ;;  %p2109_p4 = por %p2108_p1, %p2107_p10 }
  0x59   : > { %p2103_p0 = pneg %p2102_p2 }
  0x5b   : > { %p2110_p5 = pnand %p2109_p4, %p2103_p0 }
  0x5d   : > { %2113 = shalt.err (!%p2110_p5)
}
  0x5e   : > { %1976 = dma.hbm_to_vmem [thread:$0]  (!%p2448_p8), %s3010_s0, 256, %s189_s7, [#allocation7]  }
  0x5f   : > { %s2114_s20 = scalar_lea.hbm %s2455_s26, 32  ;;  %p3039_p12 = scmp.ne.s32.totalorder %s3031_s9, 0 }
  0x60   : > { %p2115_p13 = scmp.ne.s32.totalorder %s2455_s26, %s2114_s20  ;;  %s2119_s27 = scalar_lea.hbm %s3012_s2, 224 }
  0x61   : > { %p3040_p2 = pneg %p3039_p12  ;;  %p2120_p5 = scmp.lt.u32.totalorder %s2455_s26, %s3012_s2 }
  0x62   : > { %p2121_p0 = scmp.lt.u32.totalorder %s2119_s27, %s2114_s20  ;;  %p2123_p10 = scmp.lt.u32.totalorder %s2114_s20, %s2455_s26 }
  0x63   : > { %p2117_p7 = pnand %p2115_p13, %p3040_p2 }
  0x64   : > { %p2122_p1 = por %p2121_p0, %p2120_p5 }
  0x65   : > { %p2118_p11 = pneg %p2117_p7 }
  0x66   : > { %p2124_p4 = por %p2123_p10, %p2122_p1 }
  0x68   : > { %p2125_p9 = pnand %p2124_p4, %p2118_p11 }
  0x6a   : > { %2128 = shalt.err (!%p2125_p9)
}
  0x6b   : > { %s2129_s7 = scalar_lea.vmem %s2457_s25, 32  ;;  %p3041_p3 = pmov %p3040_p2 }
  0x6c   : > { %p2130_p8 = scmp.ne.s32.totalorder %s2457_s25, %s2129_s7  ;;  %s2275_s18 = smov [#allocation11]  }
  0x6d   : > { %s2134_s23 = sshll.u32 %s2275_s18, 4  ;;  %s2135_s23 = int_to_ptr.vmem [resolvable:$false] %s2134_s23 }
  0x6e   : > { %p2132_p6 = pnand %p2130_p8, %p3041_p3  ;;  %s2136_s1 = scalar_lea.vmem %s2135_s23, 64 }
  0x6f   : > { %p2137_p2 = scmp.lt.s32.totalorder %s2457_s25, %s2135_s23  ;;  %p2138_p7 = scmp.lt.s32.totalorder %s2136_s1, %s2129_s7 }
  0x70   : > { %p2133_p13 = pneg %p2132_p6 }
  0x71   : > { %p2139_p5 = por %p2138_p7, %p2137_p2 }
  0x73   : > { %p2140_p0 = pnand %p2139_p5, %p2133_p13 }
  0x75   : > { %2143 = shalt.err (!%p2140_p0)
}
  0x76   : > { %1983 = dma.hbm_to_vmem [thread:$0]  (!%p3039_p12), %s2455_s26, 32, %s2457_s25, %s2367_s10  }
  0x77   : > { %p3042_p11 = scmp.ne.s32.totalorder %s3037_s30, 0 }
  0x78   : > { %p3043_p1 = scmp.eq.s32.totalorder (!%p3042_p11), %s2396_s12, 0 }
  0x79   : > { %241 = sbr.rel (%p3042_p11) target bundleno = 1914 (0x77a), region = 32 }
  0x80   : > { %2227 = dma.done.wait (%p3043_p1), [#allocation7], 256   ;;  %p3044_p10 = pmov %p3043_p1 }
  0x81   : > { %s247_s17 = sand.u32 1, %s2396_s12   ;;  %s249_s29 = sand.u32 1, %s2260_s19  }
  0x82   : > { %2229 = vsyncadd (%p3044_p10), [#allocation7], 4294967040  ;;  %s1527_s20 = sshll.u32 %s249_s29, 9  ;;  %s248_s9 = scalar_lea.sflag [#allocation10], %s247_s17 }
  0x83   : > { %s2507_s11 = scalar_lea.vmem [#allocation9], %s1527_s20  ;;  %p3045_p4 = scmp.ne.s32.totalorder %s3033_s8, 0 }
  0x85   : > { %2231 = dma.done.wait (%p3045_p4), %s248_s9, 8224  }
  0x86   : > { %2233 = vsyncadd (%p3045_p4), %s248_s9, 4294959072  ;;  %s292_s25 = sand.u32 1, %s2248_s16   ;;  %s1528_s10 = sshll.u32 %s249_s29, 1 }
  0x87   : > { %s1530_s30 = sshll.u32 %s292_s25, 4  ;;  %s260_s26 = scalar_lea.vmem [#allocation11], %s1528_s10 }
  0x88   : > { %v2516_v0 = vld [vmem:[%s260_s26] sm:$0x3]  ;;  %s2518_s13 = scalar_lea.vmem [#allocation13], %s1530_s30  ;;  %p1531_p12 = scmp.ge.s32.totalorder %s2396_s12, 1 }
  0x89   : > { %v324_v1 = vld [vmem:[%s2507_s11 + $0x8] sm:$0xff] (!%p1531_p12)  ;;  %v326_v2 = vld [vmem:[%s2507_s11 + $0x18] sm:$0xff] (!%p1531_p12)  ;;  %v323_v3 = vld [vmem:[%s2507_s11] sm:$0xff] (!%p1531_p12)  ;;  %s1532_s8 = sshll.u32 (!%p1531_p12), %s2396_s12, 8 }
  0x8a   : > { %313 = sbr.rel (%p1531_p12) target bundleno = 424 (0x1a8), region = 48  ;;  %v1577_v4 = vpack.c.bf16 (!%p1531_p12), %v326_v2, %v324_v1  ;;  %v325_v5 = vld [vmem:[%s2507_s11 + $0x10] sm:$0xff] (!%p1531_p12)  ;;  %v328_v6 = vld [vmem:[%s2507_s11 + $0x28] sm:$0xff] (!%p1531_p12)  ;;  %v330_v7 = vld [vmem:[%s2507_s11 + $0x38] sm:$0xff] (!%p1531_p12)  ;;  %s315_s27 = sshra.s32 (!%p1531_p12), %s1532_s8, 7 }
  0x8b   : > { %v1579_v8 = vpack.c.bf16 (!%p1531_p12), %v325_v5, %v323_v3  ;;  %v1581_v9 = vpack.c.bf16 (!%p1531_p12), %v330_v7, %v328_v6  ;;  %v327_v10 = vld [vmem:[%s2507_s11 + $0x20] sm:$0xff] (!%p1531_p12)  ;;  %v329_v11 = vld [vmem:[%s2507_s11 + $0x30] sm:$0xff] (!%p1531_p12)  ;;  %v332_v12 = vld [vmem:[%s2507_s11 + $0x48] sm:$0xff] (!%p1531_p12)  ;;  %s1533_s6 = sshll.u32 (!%p1531_p12), %s315_s27, 3 }
  0x8c   : > { %1578 = vmatprep.subr.bf16.mxu0 (!%p1531_p12), %v1577_v4  ;;  %v334_v13 = vld [vmem:[%s2507_s11 + $0x58] sm:$0xff] (!%p1531_p12)  ;;  %v1583_v14 = vpack.c.bf16 (!%p1531_p12), %v329_v11, %v327_v10  ;;  %v331_v16 = vld [vmem:[%s2507_s11 + $0x40] sm:$0xff] (!%p1531_p12)  ;;  %v333_v17 = vld [vmem:[%s2507_s11 + $0x50] sm:$0xff] (!%p1531_p12)  ;;  %s318_s5 = scalar_lea.vmem (!%p1531_p12), [#allocation6], %s1533_s6  ;;  %s474_s7 = scalar_lea.vmem (!%p1531_p12), [#allocation2], %s1533_s6 }
  0x8d   : > { %1580 = vmatpush1.bf16.msra.mxu0 (!%p1531_p12), %v1579_v8  ;;  %v1585_v15 = vpack.c.bf16 (!%p1531_p12), %v334_v13, %v332_v12  ;;  %v336_v18 = vld [vmem:[%s2507_s11 + $0x68] sm:$0xff] (!%p1531_p12)  ;;  %v338_v19 = vld [vmem:[%s2507_s11 + $0x78] sm:$0xff] (!%p1531_p12)  ;;  %v1587_v20 = vpack.c.bf16 (!%p1531_p12), %v333_v17, %v331_v16  ;;  %v335_v22 = vld [vmem:[%s2507_s11 + $0x60] sm:$0xff] (!%p1531_p12) }
  0x8e   : > { %1582 = vmatprep.subr.bf16.mxu0 (!%p1531_p12), %v1581_v9  ;;  %v1589_v21 = vpack.c.bf16 (!%p1531_p12), %v338_v19, %v336_v18  ;;  %v337_v23 = vld [vmem:[%s2507_s11 + $0x70] sm:$0xff] (!%p1531_p12)  ;;  %v340_v24 = vld [vmem:[%s2507_s11 + $0x88] sm:$0xff] (!%p1531_p12)  ;;  %v342_v25 = vld [vmem:[%s2507_s11 + $0x98] sm:$0xff] (!%p1531_p12) }
  0x8f   : > { %v1591_v26 = vpack.c.bf16 (!%p1531_p12), %v337_v23, %v335_v22  ;;  %v1593_v27 = vpack.c.bf16 (!%p1531_p12), %v342_v25, %v340_v24  ;;  %v339_v28 = vld [vmem:[%s2507_s11 + $0x80] sm:$0xff] (!%p1531_p12)  ;;  %v341_v29 = vld [vmem:[%s2507_s11 + $0x90] sm:$0xff] (!%p1531_p12)  ;;  %v344_v30 = vld [vmem:[%s2507_s11 + $0xa8] sm:$0xff] (!%p1531_p12) }
  0x90   : > { %v346_v31 = vld [vmem:[%s2507_s11 + $0xb8] sm:$0xff] (!%p1531_p12)  ;;  %v1595_v32 = vpack.c.bf16 (!%p1531_p12), %v341_v29, %v339_v28  ;;  %v343_v34 = vld [vmem:[%s2507_s11 + $0xa0] sm:$0xff] (!%p1531_p12)  ;;  %v345_v35 = vld [vmem:[%s2507_s11 + $0xb0] sm:$0xff] (!%p1531_p12) }
  0x91   : > { %1584 = vmatpush1.bf16.msra.mxu0 %v1583_v14  ;;  %v1597_v33 = vpack.c.bf16 %v346_v31, %v344_v30  ;;  %v348_v36 = vld [vmem:[%s2507_s11 + $0xc8] sm:$0xff]  ;;  %v350_v37 = vld [vmem:[%s2507_s11 + $0xd8] sm:$0xff]  ;;  %v1599_v38 = vpack.c.bf16 %v345_v35, %v343_v34  ;;  %v347_v40 = vld [vmem:[%s2507_s11 + $0xc0] sm:$0xff] }
  0x92   : > { %1586 = vmatprep.subr.bf16.mxu0 %v1585_v15  ;;  %v1601_v39 = vpack.c.bf16 %v350_v37, %v348_v36  ;;  %v349_v41 = vld [vmem:[%s2507_s11 + $0xd0] sm:$0xff]  ;;  %v322_v42 = vld [vmem:[#allocation6 + $0x8] sm:$0xff]  ;;  %v352_v43 = vld [vmem:[%s2507_s11 + $0xe8] sm:$0xff]  ;;  %v388_v36 = vlaneseq }
  0x93   : > { %v354_v44 = vld [vmem:[%s2507_s11 + $0xf8] sm:$0xff]  ;;  %462 = vmatprep.mubr.f32.mxu0 %v322_v42  ;;  %v1603_v45 = vpack.c.bf16 %v349_v41, %v347_v40  ;;  %v351_v47 = vld [vmem:[%s2507_s11 + $0xe0] sm:$0xff]  ;;  %v353_v48 = vld [vmem:[%s2507_s11 + $0xf0] sm:$0xff] }
  0x94   : > { %v1605_v46 = vpack.c.bf16 %v354_v44, %v352_v43  ;;  %v356_v49 = vld [vmem:[%s2507_s11 + $0x108] sm:$0xff]  ;;  %v358_v50 = vld [vmem:[%s2507_s11 + $0x118] sm:$0xff]  ;;  %v1607_v51 = vpack.c.bf16 %v353_v48, %v351_v47  ;;  %v355_v53 = vld [vmem:[%s2507_s11 + $0x100] sm:$0xff]  ;;  %v389_v37 = vshrl.u32 %v388_v36, 7 }
  0x95   : > { %1588 = vmatpush1.bf16.msra.mxu0 %v1587_v20  ;;  %v1609_v52 = vpack.c.bf16 %v358_v50, %v356_v49  ;;  %v357_v54 = vld [vmem:[%s2507_s11 + $0x110] sm:$0xff]  ;;  %v360_v55 = vld [vmem:[%s2507_s11 + $0x128] sm:$0xff]  ;;  %v362_v56 = vld [vmem:[%s2507_s11 + $0x138] sm:$0xff] }
  0x96   : > { %1590 = vmatprep.subr.bf16.mxu0 %v1589_v21  ;;  %v1611_v57 = vpack.c.bf16 %v357_v54, %v355_v53  ;;  %v1613_v58 = vpack.c.bf16 %v362_v56, %v360_v55  ;;  %v359_v59 = vld [vmem:[%s2507_s11 + $0x120] sm:$0xff]  ;;  %v361_v60 = vld [vmem:[%s2507_s11 + $0x130] sm:$0xff]  ;;  %v364_v61 = vld [vmem:[%s2507_s11 + $0x148] sm:$0xff] }
  0x97   : > { %v366_v62 = vld [vmem:[%s2507_s11 + $0x158] sm:$0xff]  ;;  %v1615_v63 = vpack.c.bf16 %v361_v60, %v359_v59  ;;  %v363_v2 = vld [vmem:[%s2507_s11 + $0x140] sm:$0xff]  ;;  %v365_v3 = vld [vmem:[%s2507_s11 + $0x150] sm:$0xff] }
  0x98   : > { %v1617_v1 = vpack.c.bf16 %v366_v62, %v364_v61  ;;  %v368_v4 = vld [vmem:[%s2507_s11 + $0x168] sm:$0xff]  ;;  %v370_v5 = vld [vmem:[%s2507_s11 + $0x178] sm:$0xff]  ;;  %v1619_v6 = vpack.c.bf16 %v365_v3, %v363_v2  ;;  %v367_v8 = vld [vmem:[%s2507_s11 + $0x160] sm:$0xff] }
  0x99   : > { %1592 = vmatpush1.bf16.msra.mxu0 %v1591_v26  ;;  %v1621_v7 = vpack.c.bf16 %v370_v5, %v368_v4  ;;  %v369_v9 = vld [vmem:[%s2507_s11 + $0x170] sm:$0xff]  ;;  %v372_v10 = vld [vmem:[%s2507_s11 + $0x188] sm:$0xff]  ;;  %v374_v11 = vld [vmem:[%s2507_s11 + $0x198] sm:$0xff] }
  0x9a   : > { %1594 = vmatprep.subr.bf16.mxu0 %v1593_v27  ;;  %v1623_v12 = vpack.c.bf16 %v369_v9, %v367_v8  ;;  %v1625_v13 = vpack.c.bf16 %v374_v11, %v372_v10  ;;  %v371_v14 = vld [vmem:[%s2507_s11 + $0x180] sm:$0xff]  ;;  %v373_v15 = vld [vmem:[%s2507_s11 + $0x190] sm:$0xff]  ;;  %v376_v16 = vld [vmem:[%s2507_s11 + $0x1a8] sm:$0xff] }
  0x9b   : > { %v378_v17 = vld [vmem:[%s2507_s11 + $0x1b8] sm:$0xff]  ;;  %v1627_v18 = vpack.c.bf16 %v373_v15, %v371_v14  ;;  %v375_v20 = vld [vmem:[%s2507_s11 + $0x1a0] sm:$0xff]  ;;  %v377_v21 = vld [vmem:[%s2507_s11 + $0x1b0] sm:$0xff] }
  0x9c   : > { %v1629_v19 = vpack.c.bf16 %v378_v17, %v376_v16  ;;  %v380_v22 = vld [vmem:[%s2507_s11 + $0x1c8] sm:$0xff]  ;;  %v382_v23 = vld [vmem:[%s2507_s11 + $0x1d8] sm:$0xff]  ;;  %v1631_v24 = vpack.c.bf16 %v377_v21, %v375_v20  ;;  %v379_v26 = vld [vmem:[%s2507_s11 + $0x1c0] sm:$0xff] }
  0x9d   : > { %1596 = vmatpush1.bf16.msra.mxu0 %v1595_v32  ;;  %v1633_v25 = vpack.c.bf16 %v382_v23, %v380_v22  ;;  %v381_v27 = vld [vmem:[%s2507_s11 + $0x1d0] sm:$0xff]  ;;  %v384_v28 = vld [vmem:[%s2507_s11 + $0x1e8] sm:$0xff]  ;;  %v386_v29 = vld [vmem:[%s2507_s11 + $0x1f8] sm:$0xff] }
  0x9e   : > { %1598 = vmatprep.subr.bf16.mxu0 %v1597_v33  ;;  %v1635_v30 = vpack.c.bf16 %v381_v27, %v379_v26  ;;  %v1637_v31 = vpack.c.bf16 %v386_v29, %v384_v28  ;;  %v383_v32 = vld [vmem:[%s2507_s11 + $0x1e0] sm:$0xff]  ;;  %v385_v33 = vld [vmem:[%s2507_s11 + $0x1f0] sm:$0xff] }
  0x9f   : > { %v1639_v34 = vpack.c.bf16 %v385_v33, %v383_v32  ;;  %v321_v35 = vld [vmem:[#allocation6] sm:$0xff] }
  0xa0   : > { %v319_v42 = vld [vmem:[%s318_s5] sm:$0xff] }
  0xa1   : > { %1600 = vmatpush1.bf16.msra.mxu0 %v1599_v38  ;;  %v390_v38 = vsub.s32 0, %v389_v37 }
  0xa2   : > { %1602 = vmatprep.subr.bf16.mxu0 %v1601_v39  ;;  %v394_v39 = vsub.s32 1, %v389_v37 }
  0xa3   : > { %v391_v40 = vrot.slane %v2516_v0, %v390_v38 }
  0xa4   : > { %v395_v41 = vrot.slane %v2516_v0, %v394_v39 }
  0xa5   : > { %1604 = vmatpush1.bf16.msra.mxu0 %v1603_v45  ;;  %v320_v45 = vld [vmem:[%s318_s5 + $0x8] sm:$0xff] }
  0xa6   : > { %1606 = vmatprep.subr.bf16.mxu0 %v1605_v46 }
  0xa9   : > { %1608 = vmatpush1.bf16.msra.mxu0 %v1607_v51 }
  0xaa   : > { %1610 = vmatprep.subr.bf16.mxu0 %v1609_v52 }
  0xad   : > { %1612 = vmatpush1.bf16.msra.mxu0 %v1611_v57 }
  0xae   : > { %1614 = vmatprep.subr.bf16.mxu0 %v1613_v58 }
  0xb1   : > { %1616 = vmatpush1.bf16.msra.mxu0 %v1615_v63 }
  0xb2   : > { %1618 = vmatprep.subr.bf16.mxu0 %v1617_v1 }
  0xb5   : > { %1620 = vmatpush1.bf16.msra.mxu0 %v1619_v6 }
  0xb6   : > { %1622 = vmatprep.subr.bf16.mxu0 %v1621_v7 }
  0xb9   : > { %1624 = vmatpush1.bf16.msra.mxu0 %v1623_v12 }
  0xba   : > { %1626 = vmatprep.subr.bf16.mxu0 %v1625_v13 }
  0xbd   : > { %1628 = vmatpush1.bf16.msra.mxu0 %v1627_v18 }
  0xbe   : > { %1630 = vmatprep.subr.bf16.mxu0 %v1629_v19 }
  0xc1   : > { %1632 = vmatpush1.bf16.msra.mxu0 %v1631_v24 }
  0xc2   : > { %1634 = vmatprep.subr.bf16.mxu0 %v1633_v25 }
  0xc5   : > { %1636 = vmatpush1.bf16.msra.mxu0 %v1635_v30 }
  0xc6   : > { %1638 = vmatprep.subr.bf16.mxu0 %v1637_v31 }
  0xc9   : > { %1640 = vmatpush1.bf16.msra.mxu0 %v1639_v34 }
  0xcc   : > { %463 = vmatmul.mubr.f32.vlgmr.msra.gmra.mrb[0].mxu0 %v321_v35 }
 0x19f   : > { %v464_v43 = vpop.f32.mrb[0].mxu0 }
 0x1a0   : > { %v465_v44 = vadd.f32 %v464_v43, %v391_v40  ;;  %v466_v46 = vpop.f32.mrb[1].mxu0 }
 0x1a1   : > { %v467_v47 = vadd.f32 %v466_v46, %v395_v41 }
 0x1a2   : > { %v469_v48 = vadd.f32 %v465_v44, %v319_v42 }
 0x1a3   : > { %v470_v49 = vadd.f32 %v467_v47, %v320_v45 }
 0x1a4   : > { %v471_v50 = vmax.f32 %v469_v48, 0.0 }
 0x1a5   : > { %v472_v51 = vmax.f32 %v470_v49, 0.0 }
 0x1a6   : > { %475 = vst [vmem:[%s474_s7] sm:$0xff] %v471_v50 }
 0x1a7   : > { %476 = vst [vmem:[%s474_s7 + $0x8] sm:$0xff] %v472_v51 }
 0x1a8 PF: > { %p478_p9 = scmp.lt.s32.totalorder %s2396_s12, 2 }
 0x1aa   : > { %p479_p8 = pnand %p1531_p12, %p478_p9 }
 0x1ab   : > { %v494_v52 = vld [vmem:[%s2507_s11 + $0x8] sm:$0xff] (!%p479_p8)  ;;  %v496_v53 = vld [vmem:[%s2507_s11 + $0x18] sm:$0xff] (!%p479_p8)  ;;  %v493_v54 = vld [vmem:[%s2507_s11] sm:$0xff] (!%p479_p8)  ;;  %s1535_s18 = sadd.s32 (!%p479_p8), 4294967295, %s2396_s12 }
 0x1ac   : > { %482 = sbr.rel (%p479_p8) target bundleno = 714 (0x2ca), region = 52  ;;  %v1641_v55 = vpack.c.bf16 (!%p479_p8), %v496_v53, %v494_v52  ;;  %v495_v56 = vld [vmem:[%s2507_s11 + $0x10] sm:$0xff] (!%p479_p8)  ;;  %v498_v57 = vld [vmem:[%s2507_s11 + $0x28] sm:$0xff] (!%p479_p8)  ;;  %v500_v58 = vld [vmem:[%s2507_s11 + $0x38] sm:$0xff] (!%p479_p8)  ;;  %s1536_s23 = sshll.u32 (!%p479_p8), %s1535_s18, 8 }
 0x1ad   : > { %v1643_v59 = vpack.c.bf16 (!%p479_p8), %v495_v56, %v493_v54  ;;  %v1645_v60 = vpack.c.bf16 (!%p479_p8), %v500_v58, %v498_v57  ;;  %v497_v61 = vld [vmem:[%s2507_s11 + $0x20] sm:$0xff] (!%p479_p8)  ;;  %v499_v62 = vld [vmem:[%s2507_s11 + $0x30] sm:$0xff] (!%p479_p8)  ;;  %v502_v63 = vld [vmem:[%s2507_s11 + $0x48] sm:$0xff] (!%p479_p8)  ;;  %s485_s1 = sshra.s32 (!%p479_p8), %s1536_s23, 7 }
 0x1ae   : > { %1642 = vmatprep.subr.bf16.mxu0 (!%p479_p8), %v1641_v55  ;;  %v504_v1 = vld [vmem:[%s2507_s11 + $0x58] sm:$0xff] (!%p479_p8)  ;;  %v1647_v2 = vpack.c.bf16 (!%p479_p8), %v499_v62, %v497_v61  ;;  %v501_v4 = vld [vmem:[%s2507_s11 + $0x40] sm:$0xff] (!%p479_p8)  ;;  %v503_v5 = vld [vmem:[%s2507_s11 + $0x50] sm:$0xff] (!%p479_p8)  ;;  %s1537_s17 = sshll.u32 (!%p479_p8), %s485_s1, 3 }
 0x1af   : > { %1644 = vmatpush1.bf16.msra.mxu0 (!%p479_p8), %v1643_v59  ;;  %v1649_v3 = vpack.c.bf16 (!%p479_p8), %v504_v1, %v502_v63  ;;  %v506_v6 = vld [vmem:[%s2507_s11 + $0x68] sm:$0xff] (!%p479_p8)  ;;  %v508_v7 = vld [vmem:[%s2507_s11 + $0x78] sm:$0xff] (!%p479_p8)  ;;  %v1651_v8 = vpack.c.bf16 (!%p479_p8), %v503_v5, %v501_v4  ;;  %v505_v10 = vld [vmem:[%s2507_s11 + $0x60] sm:$0xff] (!%p479_p8)  ;;  %s488_s29 = scalar_lea.vmem (!%p479_p8), [#allocation6], %s1537_s17  ;;  %s644_s20 = scalar_lea.vmem (!%p479_p8), [#allocation3], %s1537_s17 }
 0x1b0   : > { %1646 = vmatprep.subr.bf16.mxu0 (!%p479_p8), %v1645_v60  ;;  %v1653_v9 = vpack.c.bf16 (!%p479_p8), %v508_v7, %v506_v6  ;;  %v507_v11 = vld [vmem:[%s2507_s11 + $0x70] sm:$0xff] (!%p479_p8)  ;;  %v510_v12 = vld [vmem:[%s2507_s11 + $0x88] sm:$0xff] (!%p479_p8)  ;;  %v512_v13 = vld [vmem:[%s2507_s11 + $0x98] sm:$0xff] (!%p479_p8) }
 0x1b1   : > { %v1655_v14 = vpack.c.bf16 (!%p479_p8), %v507_v11, %v505_v10  ;;  %v1657_v15 = vpack.c.bf16 (!%p479_p8), %v512_v13, %v510_v12  ;;  %v509_v16 = vld [vmem:[%s2507_s11 + $0x80] sm:$0xff] (!%p479_p8)  ;;  %v511_v17 = vld [vmem:[%s2507_s11 + $0x90] sm:$0xff] (!%p479_p8)  ;;  %v514_v18 = vld [vmem:[%s2507_s11 + $0xa8] sm:$0xff] (!%p479_p8) }
 0x1b2   : > { %v516_v19 = vld [vmem:[%s2507_s11 + $0xb8] sm:$0xff] (!%p479_p8)  ;;  %v1659_v20 = vpack.c.bf16 (!%p479_p8), %v511_v17, %v509_v16  ;;  %v513_v22 = vld [vmem:[%s2507_s11 + $0xa0] sm:$0xff] (!%p479_p8)  ;;  %v515_v23 = vld [vmem:[%s2507_s11 + $0xb0] sm:$0xff] (!%p479_p8) }
 0x1b3   : > { %1648 = vmatpush1.bf16.msra.mxu0 %v1647_v2  ;;  %v1661_v21 = vpack.c.bf16 %v516_v19, %v514_v18  ;;  %v518_v24 = vld [vmem:[%s2507_s11 + $0xc8] sm:$0xff]  ;;  %v520_v25 = vld [vmem:[%s2507_s11 + $0xd8] sm:$0xff]  ;;  %v1663_v26 = vpack.c.bf16 %v515_v23, %v513_v22  ;;  %v517_v28 = vld [vmem:[%s2507_s11 + $0xc0] sm:$0xff] }
 0x1b4   : > { %1650 = vmatprep.subr.bf16.mxu0 %v1649_v3  ;;  %v1665_v27 = vpack.c.bf16 %v520_v25, %v518_v24  ;;  %v519_v29 = vld [vmem:[%s2507_s11 + $0xd0] sm:$0xff]  ;;  %v492_v30 = vld [vmem:[#allocation6 + $0x8] sm:$0xff]  ;;  %v522_v31 = vld [vmem:[%s2507_s11 + $0xe8] sm:$0xff]  ;;  %v558_v24 = vlaneseq }
 0x1b5   : > { %v524_v32 = vld [vmem:[%s2507_s11 + $0xf8] sm:$0xff]  ;;  %632 = vmatprep.mubr.f32.mxu0 %v492_v30  ;;  %v1667_v33 = vpack.c.bf16 %v519_v29, %v517_v28  ;;  %v521_v35 = vld [vmem:[%s2507_s11 + $0xe0] sm:$0xff]  ;;  %v523_v36 = vld [vmem:[%s2507_s11 + $0xf0] sm:$0xff] }
 0x1b6   : > { %v1669_v34 = vpack.c.bf16 %v524_v32, %v522_v31  ;;  %v526_v37 = vld [vmem:[%s2507_s11 + $0x108] sm:$0xff]  ;;  %v528_v38 = vld [vmem:[%s2507_s11 + $0x118] sm:$0xff]  ;;  %v1671_v39 = vpack.c.bf16 %v523_v36, %v521_v35  ;;  %v525_v41 = vld [vmem:[%s2507_s11 + $0x100] sm:$0xff]  ;;  %v559_v25 = vshrl.u32 %v558_v24, 7 }
 0x1b7   : > { %1652 = vmatpush1.bf16.msra.mxu0 %v1651_v8  ;;  %v1673_v40 = vpack.c.bf16 %v528_v38, %v526_v37  ;;  %v527_v42 = vld [vmem:[%s2507_s11 + $0x110] sm:$0xff]  ;;  %v530_v43 = vld [vmem:[%s2507_s11 + $0x128] sm:$0xff]  ;;  %v532_v44 = vld [vmem:[%s2507_s11 + $0x138] sm:$0xff] }
 0x1b8   : > { %1654 = vmatprep.subr.bf16.mxu0 %v1653_v9  ;;  %v1675_v45 = vpack.c.bf16 %v527_v42, %v525_v41  ;;  %v1677_v46 = vpack.c.bf16 %v532_v44, %v530_v43  ;;  %v529_v47 = vld [vmem:[%s2507_s11 + $0x120] sm:$0xff]  ;;  %v531_v48 = vld [vmem:[%s2507_s11 + $0x130] sm:$0xff]  ;;  %v534_v49 = vld [vmem:[%s2507_s11 + $0x148] sm:$0xff] }
 0x1b9   : > { %v536_v50 = vld [vmem:[%s2507_s11 + $0x158] sm:$0xff]  ;;  %v1679_v51 = vpack.c.bf16 %v531_v48, %v529_v47  ;;  %v533_v53 = vld [vmem:[%s2507_s11 + $0x140] sm:$0xff]  ;;  %v535_v54 = vld [vmem:[%s2507_s11 + $0x150] sm:$0xff] }
 0x1ba   : > { %v1681_v52 = vpack.c.bf16 %v536_v50, %v534_v49  ;;  %v538_v55 = vld [vmem:[%s2507_s11 + $0x168] sm:$0xff]  ;;  %v540_v56 = vld [vmem:[%s2507_s11 + $0x178] sm:$0xff]  ;;  %v1683_v57 = vpack.c.bf16 %v535_v54, %v533_v53  ;;  %v537_v59 = vld [vmem:[%s2507_s11 + $0x160] sm:$0xff] }
 0x1bb   : > { %1656 = vmatpush1.bf16.msra.mxu0 %v1655_v14  ;;  %v1685_v58 = vpack.c.bf16 %v540_v56, %v538_v55  ;;  %v539_v60 = vld [vmem:[%s2507_s11 + $0x170] sm:$0xff]  ;;  %v542_v61 = vld [vmem:[%s2507_s11 + $0x188] sm:$0xff]  ;;  %v544_v62 = vld [vmem:[%s2507_s11 + $0x198] sm:$0xff] }
 0x1bc   : > { %1658 = vmatprep.subr.bf16.mxu0 %v1657_v15  ;;  %v1687_v63 = vpack.c.bf16 %v539_v60, %v537_v59  ;;  %v1689_v1 = vpack.c.bf16 %v544_v62, %v542_v61  ;;  %v541_v2 = vld [vmem:[%s2507_s11 + $0x180] sm:$0xff]  ;;  %v543_v3 = vld [vmem:[%s2507_s11 + $0x190] sm:$0xff]  ;;  %v546_v4 = vld [vmem:[%s2507_s11 + $0x1a8] sm:$0xff] }
 0x1bd   : > { %v548_v5 = vld [vmem:[%s2507_s11 + $0x1b8] sm:$0xff]  ;;  %v1691_v6 = vpack.c.bf16 %v543_v3, %v541_v2  ;;  %v545_v8 = vld [vmem:[%s2507_s11 + $0x1a0] sm:$0xff]  ;;  %v547_v9 = vld [vmem:[%s2507_s11 + $0x1b0] sm:$0xff] }
 0x1be   : > { %v1693_v7 = vpack.c.bf16 %v548_v5, %v546_v4  ;;  %v550_v10 = vld [vmem:[%s2507_s11 + $0x1c8] sm:$0xff]  ;;  %v552_v11 = vld [vmem:[%s2507_s11 + $0x1d8] sm:$0xff]  ;;  %v1695_v12 = vpack.c.bf16 %v547_v9, %v545_v8  ;;  %v549_v14 = vld [vmem:[%s2507_s11 + $0x1c0] sm:$0xff] }
 0x1bf   : > { %1660 = vmatpush1.bf16.msra.mxu0 %v1659_v20  ;;  %v1697_v13 = vpack.c.bf16 %v552_v11, %v550_v10  ;;  %v551_v15 = vld [vmem:[%s2507_s11 + $0x1d0] sm:$0xff]  ;;  %v554_v16 = vld [vmem:[%s2507_s11 + $0x1e8] sm:$0xff]  ;;  %v556_v17 = vld [vmem:[%s2507_s11 + $0x1f8] sm:$0xff] }
 0x1c0   : > { %1662 = vmatprep.subr.bf16.mxu0 %v1661_v21  ;;  %v1699_v18 = vpack.c.bf16 %v551_v15, %v549_v14  ;;  %v1701_v19 = vpack.c.bf16 %v556_v17, %v554_v16  ;;  %v553_v20 = vld [vmem:[%s2507_s11 + $0x1e0] sm:$0xff]  ;;  %v555_v21 = vld [vmem:[%s2507_s11 + $0x1f0] sm:$0xff] }
 0x1c1   : > { %v1703_v22 = vpack.c.bf16 %v555_v21, %v553_v20  ;;  %v491_v23 = vld [vmem:[#allocation6] sm:$0xff] }
 0x1c2   : > { %v489_v30 = vld [vmem:[%s488_s29] sm:$0xff] }
 0x1c3   : > { %1664 = vmatpush1.bf16.msra.mxu0 %v1663_v26  ;;  %v560_v26 = vsub.s32 0, %v559_v25 }
 0x1c4   : > { %1666 = vmatprep.subr.bf16.mxu0 %v1665_v27  ;;  %v564_v27 = vsub.s32 1, %v559_v25 }
 0x1c5   : > { %v561_v28 = vrot.slane %v2516_v0, %v560_v26 }
 0x1c6   : > { %v565_v29 = vrot.slane %v2516_v0, %v564_v27 }
 0x1c7   : > { %1668 = vmatpush1.bf16.msra.mxu0 %v1667_v33  ;;  %v490_v33 = vld [vmem:[%s488_s29 + $0x8] sm:$0xff] }
 0x1c8   : > { %1670 = vmatprep.subr.bf16.mxu0 %v1669_v34 }
 0x1cb   : > { %1672 = vmatpush1.bf16.msra.mxu0 %v1671_v39 }
 0x1cc   : > { %1674 = vmatprep.subr.bf16.mxu0 %v1673_v40 }
 0x1cf   : > { %1676 = vmatpush1.bf16.msra.mxu0 %v1675_v45 }
 0x1d0   : > { %1678 = vmatprep.subr.bf16.mxu0 %v1677_v46 }
 0x1d3   : > { %1680 = vmatpush1.bf16.msra.mxu0 %v1679_v51 }
 0x1d4   : > { %1682 = vmatprep.subr.bf16.mxu0 %v1681_v52 }
 0x1d7   : > { %1684 = vmatpush1.bf16.msra.mxu0 %v1683_v57 }
 0x1d8   : > { %1686 = vmatprep.subr.bf16.mxu0 %v1685_v58 }
 0x1db   : > { %1688 = vmatpush1.bf16.msra.mxu0 %v1687_v63 }
 0x1dc   : > { %1690 = vmatprep.subr.bf16.mxu0 %v1689_v1 }
 0x1df   : > { %1692 = vmatpush1.bf16.msra.mxu0 %v1691_v6 }
 0x1e0   : > { %1694 = vmatprep.subr.bf16.mxu0 %v1693_v7 }
 0x1e3   : > { %1696 = vmatpush1.bf16.msra.mxu0 %v1695_v12 }
 0x1e4   : > { %1698 = vmatprep.subr.bf16.mxu0 %v1697_v13 }
 0x1e7   : > { %1700 = vmatpush1.bf16.msra.mxu0 %v1699_v18 }
 0x1e8   : > { %1702 = vmatprep.subr.bf16.mxu0 %v1701_v19 }
 0x1eb   : > { %1704 = vmatpush1.bf16.msra.mxu0 %v1703_v22 }
 0x1ee   : > { %633 = vmatmul.mubr.f32.vlgmr.msra.gmra.mrb[0].mxu0 %v491_v23 }
 0x2c1   : > { %v634_v31 = vpop.f32.mrb[0].mxu0 }
 0x2c2   : > { %v635_v32 = vadd.f32 %v634_v31, %v561_v28  ;;  %v636_v34 = vpop.f32.mrb[1].mxu0 }
 0x2c3   : > { %v637_v35 = vadd.f32 %v636_v34, %v565_v29 }
 0x2c4   : > { %v639_v36 = vadd.f32 %v635_v32, %v489_v30 }
 0x2c5   : > { %v640_v37 = vadd.f32 %v637_v35, %v490_v33 }
 0x2c6   : > { %v641_v38 = vmax.f32 %v639_v36, 0.0 }
 0x2c7   : > { %v642_v39 = vmax.f32 %v640_v37, 0.0 }
 0x2c8   : > { %645 = vst [vmem:[%s644_s20] sm:$0xff] %v641_v38 }
 0x2c9   : > { %646 = vst [vmem:[%s644_s20 + $0x8] sm:$0xff] %v642_v39 }
 0x2ca PF: > { %p647_p3 = scmp.ge.s32.totalorder %s2396_s12, 2  ;;  %p648_p6 = scmp.lt.s32.totalorder %s2396_s12, 3 }
 0x2cc   : > { %p649_p13 = pnand %p648_p6, %p647_p3 }
 0x2cd   : > { %v664_v40 = vld [vmem:[%s2507_s11 + $0x8] sm:$0xff] (!%p649_p13)  ;;  %v666_v41 = vld [vmem:[%s2507_s11 + $0x18] sm:$0xff] (!%p649_p13)  ;;  %v663_v42 = vld [vmem:[%s2507_s11] sm:$0xff] (!%p649_p13)  ;;  %s1539_s9 = sadd.s32 (!%p649_p13), 4294967294, %s2396_s12 }
 0x2ce   : > { %652 = sbr.rel (%p649_p13) target bundleno = 1004 (0x3ec), region = 56  ;;  %v1705_v43 = vpack.c.bf16 (!%p649_p13), %v666_v41, %v664_v40  ;;  %v665_v44 = vld [vmem:[%s2507_s11 + $0x10] sm:$0xff] (!%p649_p13)  ;;  %v668_v45 = vld [vmem:[%s2507_s11 + $0x28] sm:$0xff] (!%p649_p13)  ;;  %v670_v46 = vld [vmem:[%s2507_s11 + $0x38] sm:$0xff] (!%p649_p13)  ;;  %s1540_s10 = sshll.u32 (!%p649_p13), %s1539_s9, 8 }
 0x2cf   : > { %v1707_v47 = vpack.c.bf16 (!%p649_p13), %v665_v44, %v663_v42  ;;  %v1709_v48 = vpack.c.bf16 (!%p649_p13), %v670_v46, %v668_v45  ;;  %v667_v49 = vld [vmem:[%s2507_s11 + $0x20] sm:$0xff] (!%p649_p13)  ;;  %v669_v50 = vld [vmem:[%s2507_s11 + $0x30] sm:$0xff] (!%p649_p13)  ;;  %v672_v51 = vld [vmem:[%s2507_s11 + $0x48] sm:$0xff] (!%p649_p13)  ;;  %s655_s30 = sshra.s32 (!%p649_p13), %s1540_s10, 7 }
 0x2d0   : > { %1706 = vmatprep.subr.bf16.mxu0 (!%p649_p13), %v1705_v43  ;;  %v674_v52 = vld [vmem:[%s2507_s11 + $0x58] sm:$0xff] (!%p649_p13)  ;;  %v1711_v53 = vpack.c.bf16 (!%p649_p13), %v669_v50, %v667_v49  ;;  %v671_v55 = vld [vmem:[%s2507_s11 + $0x40] sm:$0xff] (!%p649_p13)  ;;  %v673_v56 = vld [vmem:[%s2507_s11 + $0x50] sm:$0xff] (!%p649_p13)  ;;  %s1541_s26 = sshll.u32 (!%p649_p13), %s655_s30, 3 }
 0x2d1   : > { %1708 = vmatpush1.bf16.msra.mxu0 (!%p649_p13), %v1707_v47  ;;  %v1713_v54 = vpack.c.bf16 (!%p649_p13), %v674_v52, %v672_v51  ;;  %v676_v57 = vld [vmem:[%s2507_s11 + $0x68] sm:$0xff] (!%p649_p13)  ;;  %v678_v58 = vld [vmem:[%s2507_s11 + $0x78] sm:$0xff] (!%p649_p13)  ;;  %v1715_v59 = vpack.c.bf16 (!%p649_p13), %v673_v56, %v671_v55  ;;  %v675_v61 = vld [vmem:[%s2507_s11 + $0x60] sm:$0xff] (!%p649_p13)  ;;  %s658_s8 = scalar_lea.vmem (!%p649_p13), [#allocation2], %s1541_s26  ;;  %s814_s27 = scalar_lea.vmem (!%p649_p13), [#allocation4], %s1541_s26 }
 0x2d2   : > { %1710 = vmatprep.subr.bf16.mxu0 (!%p649_p13), %v1709_v48  ;;  %v1717_v60 = vpack.c.bf16 (!%p649_p13), %v678_v58, %v676_v57  ;;  %v677_v62 = vld [vmem:[%s2507_s11 + $0x70] sm:$0xff] (!%p649_p13)  ;;  %v680_v63 = vld [vmem:[%s2507_s11 + $0x88] sm:$0xff] (!%p649_p13)  ;;  %v682_v1 = vld [vmem:[%s2507_s11 + $0x98] sm:$0xff] (!%p649_p13) }
 0x2d3   : > { %v1719_v2 = vpack.c.bf16 (!%p649_p13), %v677_v62, %v675_v61  ;;  %v1721_v3 = vpack.c.bf16 (!%p649_p13), %v682_v1, %v680_v63  ;;  %v679_v4 = vld [vmem:[%s2507_s11 + $0x80] sm:$0xff] (!%p649_p13)  ;;  %v681_v5 = vld [vmem:[%s2507_s11 + $0x90] sm:$0xff] (!%p649_p13)  ;;  %v684_v6 = vld [vmem:[%s2507_s11 + $0xa8] sm:$0xff] (!%p649_p13) }
 0x2d4   : > { %v686_v7 = vld [vmem:[%s2507_s11 + $0xb8] sm:$0xff] (!%p649_p13)  ;;  %v1723_v8 = vpack.c.bf16 (!%p649_p13), %v681_v5, %v679_v4  ;;  %v683_v10 = vld [vmem:[%s2507_s11 + $0xa0] sm:$0xff] (!%p649_p13)  ;;  %v685_v11 = vld [vmem:[%s2507_s11 + $0xb0] sm:$0xff] (!%p649_p13) }
 0x2d5   : > { %1712 = vmatpush1.bf16.msra.mxu0 %v1711_v53  ;;  %v1725_v9 = vpack.c.bf16 %v686_v7, %v684_v6  ;;  %v688_v12 = vld [vmem:[%s2507_s11 + $0xc8] sm:$0xff]  ;;  %v690_v13 = vld [vmem:[%s2507_s11 + $0xd8] sm:$0xff]  ;;  %v1727_v14 = vpack.c.bf16 %v685_v11, %v683_v10  ;;  %v687_v16 = vld [vmem:[%s2507_s11 + $0xc0] sm:$0xff] }
 0x2d6   : > { %1714 = vmatprep.subr.bf16.mxu0 %v1713_v54  ;;  %v1729_v15 = vpack.c.bf16 %v690_v13, %v688_v12  ;;  %v689_v17 = vld [vmem:[%s2507_s11 + $0xd0] sm:$0xff]  ;;  %v662_v18 = vld [vmem:[#allocation2 + $0x8] sm:$0xff]  ;;  %v692_v19 = vld [vmem:[%s2507_s11 + $0xe8] sm:$0xff]  ;;  %v728_v12 = vlaneseq }
 0x2d7   : > { %v694_v20 = vld [vmem:[%s2507_s11 + $0xf8] sm:$0xff]  ;;  %802 = vmatprep.mubr.f32.mxu0 %v662_v18  ;;  %v1731_v21 = vpack.c.bf16 %v689_v17, %v687_v16  ;;  %v691_v23 = vld [vmem:[%s2507_s11 + $0xe0] sm:$0xff]  ;;  %v693_v24 = vld [vmem:[%s2507_s11 + $0xf0] sm:$0xff] }
 0x2d8   : > { %v1733_v22 = vpack.c.bf16 %v694_v20, %v692_v19  ;;  %v696_v25 = vld [vmem:[%s2507_s11 + $0x108] sm:$0xff]  ;;  %v698_v26 = vld [vmem:[%s2507_s11 + $0x118] sm:$0xff]  ;;  %v1735_v27 = vpack.c.bf16 %v693_v24, %v691_v23  ;;  %v695_v29 = vld [vmem:[%s2507_s11 + $0x100] sm:$0xff]  ;;  %v729_v13 = vshrl.u32 %v728_v12, 7 }
 0x2d9   : > { %1716 = vmatpush1.bf16.msra.mxu0 %v1715_v59  ;;  %v1737_v28 = vpack.c.bf16 %v698_v26, %v696_v25  ;;  %v697_v30 = vld [vmem:[%s2507_s11 + $0x110] sm:$0xff]  ;;  %v700_v31 = vld [vmem:[%s2507_s11 + $0x128] sm:$0xff]  ;;  %v702_v32 = vld [vmem:[%s2507_s11 + $0x138] sm:$0xff] }
 0x2da   : > { %1718 = vmatprep.subr.bf16.mxu0 %v1717_v60  ;;  %v1739_v33 = vpack.c.bf16 %v697_v30, %v695_v29  ;;  %v1741_v34 = vpack.c.bf16 %v702_v32, %v700_v31  ;;  %v699_v35 = vld [vmem:[%s2507_s11 + $0x120] sm:$0xff]  ;;  %v701_v36 = vld [vmem:[%s2507_s11 + $0x130] sm:$0xff]  ;;  %v704_v37 = vld [vmem:[%s2507_s11 + $0x148] sm:$0xff] }
 0x2db   : > { %v706_v38 = vld [vmem:[%s2507_s11 + $0x158] sm:$0xff]  ;;  %v1743_v39 = vpack.c.bf16 %v701_v36, %v699_v35  ;;  %v703_v41 = vld [vmem:[%s2507_s11 + $0x140] sm:$0xff]  ;;  %v705_v42 = vld [vmem:[%s2507_s11 + $0x150] sm:$0xff] }
 0x2dc   : > { %v1745_v40 = vpack.c.bf16 %v706_v38, %v704_v37  ;;  %v708_v43 = vld [vmem:[%s2507_s11 + $0x168] sm:$0xff]  ;;  %v710_v44 = vld [vmem:[%s2507_s11 + $0x178] sm:$0xff]  ;;  %v1747_v45 = vpack.c.bf16 %v705_v42, %v703_v41  ;;  %v707_v47 = vld [vmem:[%s2507_s11 + $0x160] sm:$0xff] }
 0x2dd   : > { %1720 = vmatpush1.bf16.msra.mxu0 %v1719_v2  ;;  %v1749_v46 = vpack.c.bf16 %v710_v44, %v708_v43  ;;  %v709_v48 = vld [vmem:[%s2507_s11 + $0x170] sm:$0xff]  ;;  %v712_v49 = vld [vmem:[%s2507_s11 + $0x188] sm:$0xff]  ;;  %v714_v50 = vld [vmem:[%s2507_s11 + $0x198] sm:$0xff] }
 0x2de   : > { %1722 = vmatprep.subr.bf16.mxu0 %v1721_v3  ;;  %v1751_v51 = vpack.c.bf16 %v709_v48, %v707_v47  ;;  %v1753_v52 = vpack.c.bf16 %v714_v50, %v712_v49  ;;  %v711_v53 = vld [vmem:[%s2507_s11 + $0x180] sm:$0xff]  ;;  %v713_v54 = vld [vmem:[%s2507_s11 + $0x190] sm:$0xff]  ;;  %v716_v55 = vld [vmem:[%s2507_s11 + $0x1a8] sm:$0xff] }
 0x2df   : > { %v718_v56 = vld [vmem:[%s2507_s11 + $0x1b8] sm:$0xff]  ;;  %v1755_v57 = vpack.c.bf16 %v713_v54, %v711_v53  ;;  %v715_v59 = vld [vmem:[%s2507_s11 + $0x1a0] sm:$0xff]  ;;  %v717_v60 = vld [vmem:[%s2507_s11 + $0x1b0] sm:$0xff] }
 0x2e0   : > { %v1757_v58 = vpack.c.bf16 %v718_v56, %v716_v55  ;;  %v720_v61 = vld [vmem:[%s2507_s11 + $0x1c8] sm:$0xff]  ;;  %v722_v62 = vld [vmem:[%s2507_s11 + $0x1d8] sm:$0xff]  ;;  %v1759_v63 = vpack.c.bf16 %v717_v60, %v715_v59  ;;  %v719_v2 = vld [vmem:[%s2507_s11 + $0x1c0] sm:$0xff] }
 0x2e1   : > { %1724 = vmatpush1.bf16.msra.mxu0 %v1723_v8  ;;  %v1761_v1 = vpack.c.bf16 %v722_v62, %v720_v61  ;;  %v721_v3 = vld [vmem:[%s2507_s11 + $0x1d0] sm:$0xff]  ;;  %v724_v4 = vld [vmem:[%s2507_s11 + $0x1e8] sm:$0xff]  ;;  %v726_v5 = vld [vmem:[%s2507_s11 + $0x1f8] sm:$0xff] }
 0x2e2   : > { %1726 = vmatprep.subr.bf16.mxu0 %v1725_v9  ;;  %v1763_v6 = vpack.c.bf16 %v721_v3, %v719_v2  ;;  %v1765_v7 = vpack.c.bf16 %v726_v5, %v724_v4  ;;  %v723_v8 = vld [vmem:[%s2507_s11 + $0x1e0] sm:$0xff]  ;;  %v725_v9 = vld [vmem:[%s2507_s11 + $0x1f0] sm:$0xff] }
 0x2e3   : > { %v1767_v10 = vpack.c.bf16 %v725_v9, %v723_v8  ;;  %v661_v11 = vld [vmem:[#allocation2] sm:$0xff] }
 0x2e4   : > { %v659_v18 = vld [vmem:[%s658_s8] sm:$0xff] }
 0x2e5   : > { %1728 = vmatpush1.bf16.msra.mxu0 %v1727_v14  ;;  %v730_v14 = vsub.s32 0, %v729_v13 }
 0x2e6   : > { %1730 = vmatprep.subr.bf16.mxu0 %v1729_v15  ;;  %v734_v15 = vsub.s32 1, %v729_v13 }
 0x2e7   : > { %v731_v16 = vrot.slane %v2516_v0, %v730_v14 }
 0x2e8   : > { %v735_v17 = vrot.slane %v2516_v0, %v734_v15 }
 0x2e9   : > { %1732 = vmatpush1.bf16.msra.mxu0 %v1731_v21  ;;  %v660_v21 = vld [vmem:[%s658_s8 + $0x8] sm:$0xff] }
 0x2ea   : > { %1734 = vmatprep.subr.bf16.mxu0 %v1733_v22 }
 0x2ed   : > { %1736 = vmatpush1.bf16.msra.mxu0 %v1735_v27 }
 0x2ee   : > { %1738 = vmatprep.subr.bf16.mxu0 %v1737_v28 }
 0x2f1   : > { %1740 = vmatpush1.bf16.msra.mxu0 %v1739_v33 }
 0x2f2   : > { %1742 = vmatprep.subr.bf16.mxu0 %v1741_v34 }
 0x2f5   : > { %1744 = vmatpush1.bf16.msra.mxu0 %v1743_v39 }
 0x2f6   : > { %1746 = vmatprep.subr.bf16.mxu0 %v1745_v40 }
 0x2f9   : > { %1748 = vmatpush1.bf16.msra.mxu0 %v1747_v45 }
 0x2fa   : > { %1750 = vmatprep.subr.bf16.mxu0 %v1749_v46 }
 0x2fd   : > { %1752 = vmatpush1.bf16.msra.mxu0 %v1751_v51 }
 0x2fe   : > { %1754 = vmatprep.subr.bf16.mxu0 %v1753_v52 }
 0x301   : > { %1756 = vmatpush1.bf16.msra.mxu0 %v1755_v57 }
 0x302   : > { %1758 = vmatprep.subr.bf16.mxu0 %v1757_v58 }
 0x305   : > { %1760 = vmatpush1.bf16.msra.mxu0 %v1759_v63 }
 0x306   : > { %1762 = vmatprep.subr.bf16.mxu0 %v1761_v1 }
 0x309   : > { %1764 = vmatpush1.bf16.msra.mxu0 %v1763_v6 }
 0x30a   : > { %1766 = vmatprep.subr.bf16.mxu0 %v1765_v7 }
 0x30d   : > { %1768 = vmatpush1.bf16.msra.mxu0 %v1767_v10 }
 0x310   : > { %803 = vmatmul.mubr.f32.vlgmr.msra.gmra.mrb[0].mxu0 %v661_v11 }
 0x3e3   : > { %v804_v19 = vpop.f32.mrb[0].mxu0 }
 0x3e4   : > { %v805_v20 = vadd.f32 %v804_v19, %v731_v16  ;;  %v806_v22 = vpop.f32.mrb[1].mxu0 }
 0x3e5   : > { %v807_v23 = vadd.f32 %v806_v22, %v735_v17 }
 0x3e6   : > { %v809_v24 = vadd.f32 %v805_v20, %v659_v18 }
 0x3e7   : > { %v810_v25 = vadd.f32 %v807_v23, %v660_v21 }
 0x3e8   : > { %v811_v26 = vmax.f32 %v809_v24, 0.0 }
 0x3e9   : > { %v812_v27 = vmax.f32 %v810_v25, 0.0 }
 0x3ea   : > { %815 = vst [vmem:[%s814_s27] sm:$0xff] %v811_v26 }
 0x3eb   : > { %816 = vst [vmem:[%s814_s27 + $0x8] sm:$0xff] %v812_v27 }
 0x3ec PF: > { %p817_p2 = scmp.ge.s32.totalorder %s2396_s12, 3  ;;  %p818_p7 = scmp.lt.s32.totalorder %s2396_s12, 4 }
 0x3ee   : > { %p819_p5 = pnand %p818_p7, %p817_p2 }
 0x3ef   : > { %v834_v28 = vld [vmem:[%s2507_s11 + $0x8] sm:$0xff] (!%p819_p5)  ;;  %v836_v29 = vld [vmem:[%s2507_s11 + $0x18] sm:$0xff] (!%p819_p5)  ;;  %v833_v30 = vld [vmem:[%s2507_s11] sm:$0xff] (!%p819_p5)  ;;  %s1543_s6 = sadd.s32 (!%p819_p5), 4294967293, %s2396_s12 }
 0x3f0   : > { %822 = sbr.rel (%p819_p5) target bundleno = 1294 (0x50e), region = 60  ;;  %v1769_v31 = vpack.c.bf16 (!%p819_p5), %v836_v29, %v834_v28  ;;  %v835_v32 = vld [vmem:[%s2507_s11 + $0x10] sm:$0xff] (!%p819_p5)  ;;  %v838_v33 = vld [vmem:[%s2507_s11 + $0x28] sm:$0xff] (!%p819_p5)  ;;  %v840_v34 = vld [vmem:[%s2507_s11 + $0x38] sm:$0xff] (!%p819_p5)  ;;  %s1544_s5 = sshll.u32 (!%p819_p5), %s1543_s6, 8 }
 0x3f1   : > { %v1771_v35 = vpack.c.bf16 (!%p819_p5), %v835_v32, %v833_v30  ;;  %v1773_v36 = vpack.c.bf16 (!%p819_p5), %v840_v34, %v838_v33  ;;  %v837_v37 = vld [vmem:[%s2507_s11 + $0x20] sm:$0xff] (!%p819_p5)  ;;  %v839_v38 = vld [vmem:[%s2507_s11 + $0x30] sm:$0xff] (!%p819_p5)  ;;  %v842_v39 = vld [vmem:[%s2507_s11 + $0x48] sm:$0xff] (!%p819_p5)  ;;  %s825_s7 = sshra.s32 (!%p819_p5), %s1544_s5, 7 }
 0x3f2   : > { %1770 = vmatprep.subr.bf16.mxu0 (!%p819_p5), %v1769_v31  ;;  %v844_v40 = vld [vmem:[%s2507_s11 + $0x58] sm:$0xff] (!%p819_p5)  ;;  %v1775_v41 = vpack.c.bf16 (!%p819_p5), %v839_v38, %v837_v37  ;;  %v841_v43 = vld [vmem:[%s2507_s11 + $0x40] sm:$0xff] (!%p819_p5)  ;;  %v843_v44 = vld [vmem:[%s2507_s11 + $0x50] sm:$0xff] (!%p819_p5)  ;;  %s1545_s18 = sshll.u32 (!%p819_p5), %s825_s7, 3 }
 0x3f3   : > { %1772 = vmatpush1.bf16.msra.mxu0 (!%p819_p5), %v1771_v35  ;;  %v1777_v42 = vpack.c.bf16 (!%p819_p5), %v844_v40, %v842_v39  ;;  %v846_v45 = vld [vmem:[%s2507_s11 + $0x68] sm:$0xff] (!%p819_p5)  ;;  %v848_v46 = vld [vmem:[%s2507_s11 + $0x78] sm:$0xff] (!%p819_p5)  ;;  %v1779_v47 = vpack.c.bf16 (!%p819_p5), %v843_v44, %v841_v43  ;;  %v845_v49 = vld [vmem:[%s2507_s11 + $0x60] sm:$0xff] (!%p819_p5)  ;;  %s828_s23 = scalar_lea.vmem (!%p819_p5), [#allocation3], %s1545_s18  ;;  %s984_s1 = scalar_lea.vmem (!%p819_p5), [#allocation5], %s1545_s18 }
 0x3f4   : > { %1774 = vmatprep.subr.bf16.mxu0 (!%p819_p5), %v1773_v36  ;;  %v1781_v48 = vpack.c.bf16 (!%p819_p5), %v848_v46, %v846_v45  ;;  %v847_v50 = vld [vmem:[%s2507_s11 + $0x70] sm:$0xff] (!%p819_p5)  ;;  %v850_v51 = vld [vmem:[%s2507_s11 + $0x88] sm:$0xff] (!%p819_p5)  ;;  %v852_v52 = vld [vmem:[%s2507_s11 + $0x98] sm:$0xff] (!%p819_p5) }
 0x3f5   : > { %v1783_v53 = vpack.c.bf16 (!%p819_p5), %v847_v50, %v845_v49  ;;  %v1785_v54 = vpack.c.bf16 (!%p819_p5), %v852_v52, %v850_v51  ;;  %v849_v55 = vld [vmem:[%s2507_s11 + $0x80] sm:$0xff] (!%p819_p5)  ;;  %v851_v56 = vld [vmem:[%s2507_s11 + $0x90] sm:$0xff] (!%p819_p5)  ;;  %v854_v57 = vld [vmem:[%s2507_s11 + $0xa8] sm:$0xff] (!%p819_p5) }
 0x3f6   : > { %v856_v58 = vld [vmem:[%s2507_s11 + $0xb8] sm:$0xff] (!%p819_p5)  ;;  %v1787_v59 = vpack.c.bf16 (!%p819_p5), %v851_v56, %v849_v55  ;;  %v853_v61 = vld [vmem:[%s2507_s11 + $0xa0] sm:$0xff] (!%p819_p5)  ;;  %v855_v62 = vld [vmem:[%s2507_s11 + $0xb0] sm:$0xff] (!%p819_p5) }
 0x3f7   : > { %1776 = vmatpush1.bf16.msra.mxu0 %v1775_v41  ;;  %v1789_v60 = vpack.c.bf16 %v856_v58, %v854_v57  ;;  %v858_v63 = vld [vmem:[%s2507_s11 + $0xc8] sm:$0xff]  ;;  %v860_v1 = vld [vmem:[%s2507_s11 + $0xd8] sm:$0xff]  ;;  %v1791_v2 = vpack.c.bf16 %v855_v62, %v853_v61  ;;  %v857_v4 = vld [vmem:[%s2507_s11 + $0xc0] sm:$0xff] }
 0x3f8   : > { %1778 = vmatprep.subr.bf16.mxu0 %v1777_v42  ;;  %v1793_v3 = vpack.c.bf16 %v860_v1, %v858_v63  ;;  %v859_v5 = vld [vmem:[%s2507_s11 + $0xd0] sm:$0xff]  ;;  %v832_v6 = vld [vmem:[#allocation3 + $0x8] sm:$0xff]  ;;  %v864_v8 = vld [vmem:[%s2507_s11 + $0xf8] sm:$0xff]  ;;  %v898_v63 = vlaneseq }
 0x3f9   : > { %v862_v7 = vld [vmem:[%s2507_s11 + $0xe8] sm:$0xff]  ;;  %972 = vmatprep.mubr.f32.mxu0 %v832_v6  ;;  %v1795_v9 = vpack.c.bf16 %v859_v5, %v857_v4  ;;  %v861_v11 = vld [vmem:[%s2507_s11 + $0xe0] sm:$0xff]  ;;  %v863_v12 = vld [vmem:[%s2507_s11 + $0xf0] sm:$0xff] }
 0x3fa   : > { %v1797_v10 = vpack.c.bf16 %v864_v8, %v862_v7  ;;  %v866_v13 = vld [vmem:[%s2507_s11 + $0x108] sm:$0xff]  ;;  %v868_v14 = vld [vmem:[%s2507_s11 + $0x118] sm:$0xff]  ;;  %v1799_v15 = vpack.c.bf16 %v863_v12, %v861_v11  ;;  %v865_v17 = vld [vmem:[%s2507_s11 + $0x100] sm:$0xff]  ;;  %v899_v1 = vshrl.u32 %v898_v63, 7 }
 0x3fb   : > { %1780 = vmatpush1.bf16.msra.mxu0 %v1779_v47  ;;  %v1801_v16 = vpack.c.bf16 %v868_v14, %v866_v13  ;;  %v867_v18 = vld [vmem:[%s2507_s11 + $0x110] sm:$0xff]  ;;  %v870_v19 = vld [vmem:[%s2507_s11 + $0x128] sm:$0xff]  ;;  %v872_v20 = vld [vmem:[%s2507_s11 + $0x138] sm:$0xff] }
 0x3fc   : > { %1782 = vmatprep.subr.bf16.mxu0 %v1781_v48  ;;  %v1803_v21 = vpack.c.bf16 %v867_v18, %v865_v17  ;;  %v1805_v22 = vpack.c.bf16 %v872_v20, %v870_v19  ;;  %v869_v23 = vld [vmem:[%s2507_s11 + $0x120] sm:$0xff]  ;;  %v871_v24 = vld [vmem:[%s2507_s11 + $0x130] sm:$0xff]  ;;  %v874_v25 = vld [vmem:[%s2507_s11 + $0x148] sm:$0xff] }
 0x3fd   : > { %v876_v26 = vld [vmem:[%s2507_s11 + $0x158] sm:$0xff]  ;;  %v1807_v27 = vpack.c.bf16 %v871_v24, %v869_v23  ;;  %v873_v29 = vld [vmem:[%s2507_s11 + $0x140] sm:$0xff]  ;;  %v875_v30 = vld [vmem:[%s2507_s11 + $0x150] sm:$0xff] }
 0x3fe   : > { %v1809_v28 = vpack.c.bf16 %v876_v26, %v874_v25  ;;  %v878_v31 = vld [vmem:[%s2507_s11 + $0x168] sm:$0xff]  ;;  %v880_v32 = vld [vmem:[%s2507_s11 + $0x178] sm:$0xff]  ;;  %v1811_v33 = vpack.c.bf16 %v875_v30, %v873_v29  ;;  %v877_v35 = vld [vmem:[%s2507_s11 + $0x160] sm:$0xff] }
 0x3ff   : > { %1784 = vmatpush1.bf16.msra.mxu0 %v1783_v53  ;;  %v1813_v34 = vpack.c.bf16 %v880_v32, %v878_v31  ;;  %v879_v36 = vld [vmem:[%s2507_s11 + $0x170] sm:$0xff]  ;;  %v882_v37 = vld [vmem:[%s2507_s11 + $0x188] sm:$0xff]  ;;  %v884_v38 = vld [vmem:[%s2507_s11 + $0x198] sm:$0xff] }
 0x400   : > { %1786 = vmatprep.subr.bf16.mxu0 %v1785_v54  ;;  %v1815_v39 = vpack.c.bf16 %v879_v36, %v877_v35  ;;  %v1817_v40 = vpack.c.bf16 %v884_v38, %v882_v37  ;;  %v881_v41 = vld [vmem:[%s2507_s11 + $0x180] sm:$0xff]  ;;  %v883_v42 = vld [vmem:[%s2507_s11 + $0x190] sm:$0xff]  ;;  %v886_v43 = vld [vmem:[%s2507_s11 + $0x1a8] sm:$0xff] }
 0x401   : > { %v888_v44 = vld [vmem:[%s2507_s11 + $0x1b8] sm:$0xff]  ;;  %v1819_v45 = vpack.c.bf16 %v883_v42, %v881_v41  ;;  %v885_v47 = vld [vmem:[%s2507_s11 + $0x1a0] sm:$0xff]  ;;  %v887_v48 = vld [vmem:[%s2507_s11 + $0x1b0] sm:$0xff] }
 0x402   : > { %v1821_v46 = vpack.c.bf16 %v888_v44, %v886_v43  ;;  %v890_v49 = vld [vmem:[%s2507_s11 + $0x1c8] sm:$0xff]  ;;  %v892_v50 = vld [vmem:[%s2507_s11 + $0x1d8] sm:$0xff]  ;;  %v1823_v51 = vpack.c.bf16 %v887_v48, %v885_v47  ;;  %v889_v53 = vld [vmem:[%s2507_s11 + $0x1c0] sm:$0xff] }
 0x403   : > { %1788 = vmatpush1.bf16.msra.mxu0 %v1787_v59  ;;  %v1825_v52 = vpack.c.bf16 %v892_v50, %v890_v49  ;;  %v891_v54 = vld [vmem:[%s2507_s11 + $0x1d0] sm:$0xff]  ;;  %v894_v55 = vld [vmem:[%s2507_s11 + $0x1e8] sm:$0xff]  ;;  %v896_v56 = vld [vmem:[%s2507_s11 + $0x1f8] sm:$0xff] }
 0x404   : > { %1790 = vmatprep.subr.bf16.mxu0 %v1789_v60  ;;  %v1827_v57 = vpack.c.bf16 %v891_v54, %v889_v53  ;;  %v1829_v58 = vpack.c.bf16 %v896_v56, %v894_v55  ;;  %v893_v59 = vld [vmem:[%s2507_s11 + $0x1e0] sm:$0xff]  ;;  %v895_v60 = vld [vmem:[%s2507_s11 + $0x1f0] sm:$0xff] }
 0x405   : > { %v1831_v61 = vpack.c.bf16 %v895_v60, %v893_v59  ;;  %v831_v62 = vld [vmem:[#allocation3] sm:$0xff]  ;;  %v829_v6 = vld [vmem:[%s828_s23] sm:$0xff] }
 0x407   : > { %1792 = vmatpush1.bf16.msra.mxu0 %v1791_v2  ;;  %v900_v2 = vsub.s32 0, %v899_v1 }
 0x408   : > { %1794 = vmatprep.subr.bf16.mxu0 %v1793_v3  ;;  %v904_v3 = vsub.s32 1, %v899_v1 }
 0x409   : > { %v901_v4 = vrot.slane %v2516_v0, %v900_v2 }
 0x40a   : > { %v905_v5 = vrot.slane %v2516_v0, %v904_v3 }
 0x40b   : > { %1796 = vmatpush1.bf16.msra.mxu0 %v1795_v9  ;;  %v830_v9 = vld [vmem:[%s828_s23 + $0x8] sm:$0xff] }
 0x40c   : > { %1798 = vmatprep.subr.bf16.mxu0 %v1797_v10 }
 0x40f   : > { %1800 = vmatpush1.bf16.msra.mxu0 %v1799_v15 }
 0x410   : > { %1802 = vmatprep.subr.bf16.mxu0 %v1801_v16 }
 0x413   : > { %1804 = vmatpush1.bf16.msra.mxu0 %v1803_v21 }
 0x414   : > { %1806 = vmatprep.subr.bf16.mxu0 %v1805_v22 }
 0x417   : > { %1808 = vmatpush1.bf16.msra.mxu0 %v1807_v27 }
 0x418   : > { %1810 = vmatprep.subr.bf16.mxu0 %v1809_v28 }
 0x41b   : > { %1812 = vmatpush1.bf16.msra.mxu0 %v1811_v33 }
 0x41c   : > { %1814 = vmatprep.subr.bf16.mxu0 %v1813_v34 }
 0x41f   : > { %1816 = vmatpush1.bf16.msra.mxu0 %v1815_v39 }
 0x420   : > { %1818 = vmatprep.subr.bf16.mxu0 %v1817_v40 }
 0x423   : > { %1820 = vmatpush1.bf16.msra.mxu0 %v1819_v45 }
 0x424   : > { %1822 = vmatprep.subr.bf16.mxu0 %v1821_v46 }
 0x427   : > { %1824 = vmatpush1.bf16.msra.mxu0 %v1823_v51 }
 0x428   : > { %1826 = vmatprep.subr.bf16.mxu0 %v1825_v52 }
 0x42b   : > { %1828 = vmatpush1.bf16.msra.mxu0 %v1827_v57 }
 0x42c   : > { %1830 = vmatprep.subr.bf16.mxu0 %v1829_v58 }
 0x42f   : > { %1832 = vmatpush1.bf16.msra.mxu0 %v1831_v61 }
 0x432   : > { %973 = vmatmul.mubr.f32.vlgmr.msra.gmra.mrb[0].mxu0 %v831_v62 }
 0x505   : > { %v974_v7 = vpop.f32.mrb[0].mxu0 }
 0x506   : > { %v975_v8 = vadd.f32 %v974_v7, %v901_v4  ;;  %v976_v10 = vpop.f32.mrb[1].mxu0 }
 0x507   : > { %v977_v11 = vadd.f32 %v976_v10, %v905_v5 }
 0x508   : > { %v979_v12 = vadd.f32 %v975_v8, %v829_v6 }
 0x509   : > { %v980_v13 = vadd.f32 %v977_v11, %v830_v9 }
 0x50a   : > { %v981_v14 = vmax.f32 %v979_v12, 0.0 }
 0x50b   : > { %v982_v15 = vmax.f32 %v980_v13, 0.0 }
 0x50c   : > { %985 = vst [vmem:[%s984_s1] sm:$0xff] %v981_v14 }
 0x50d   : > { %986 = vst [vmem:[%s984_s1 + $0x8] sm:$0xff] %v982_v15 }
 0x50e PF: > { %p987_p0 = scmp.ge.s32.totalorder %s2396_s12, 4  ;;  %p988_p11 = scmp.lt.s32.totalorder %s2396_s12, 5 }
 0x510   : > { %p989_p1 = pnand %p988_p11, %p987_p0 }
 0x511   : > { %v996_v16 = vld [vmem:[%s2507_s11 + $0x8] sm:$0xff] (!%p989_p1)  ;;  %v998_v17 = vld [vmem:[%s2507_s11 + $0x18] sm:$0xff] (!%p989_p1)  ;;  %v995_v18 = vld [vmem:[%s2507_s11] sm:$0xff] (!%p989_p1) }
 0x512   : > { %992 = sbr.rel (%p989_p1) target bundleno = 1580 (0x62c), region = 64  ;;  %v1833_v19 = vpack.c.bf16 (!%p989_p1), %v998_v17, %v996_v16  ;;  %v997_v20 = vld [vmem:[%s2507_s11 + $0x10] sm:$0xff] (!%p989_p1)  ;;  %v1000_v21 = vld [vmem:[%s2507_s11 + $0x28] sm:$0xff] (!%p989_p1)  ;;  %v1002_v22 = vld [vmem:[%s2507_s11 + $0x38] sm:$0xff] (!%p989_p1) }
 0x513   : > { %v1835_v23 = vpack.c.bf16 (!%p989_p1), %v997_v20, %v995_v18  ;;  %v1837_v24 = vpack.c.bf16 (!%p989_p1), %v1002_v22, %v1000_v21  ;;  %v999_v25 = vld [vmem:[%s2507_s11 + $0x20] sm:$0xff] (!%p989_p1)  ;;  %v1001_v26 = vld [vmem:[%s2507_s11 + $0x30] sm:$0xff] (!%p989_p1)  ;;  %v1004_v27 = vld [vmem:[%s2507_s11 + $0x48] sm:$0xff] (!%p989_p1) }
 0x514   : > { %1834 = vmatprep.subr.bf16.mxu0 (!%p989_p1), %v1833_v19  ;;  %v1006_v28 = vld [vmem:[%s2507_s11 + $0x58] sm:$0xff] (!%p989_p1)  ;;  %v1839_v29 = vpack.c.bf16 (!%p989_p1), %v1001_v26, %v999_v25  ;;  %v1003_v31 = vld [vmem:[%s2507_s11 + $0x40] sm:$0xff] (!%p989_p1)  ;;  %v1005_v32 = vld [vmem:[%s2507_s11 + $0x50] sm:$0xff] (!%p989_p1) }
 0x515   : > { %1836 = vmatpush1.bf16.msra.mxu0 (!%p989_p1), %v1835_v23  ;;  %v1841_v30 = vpack.c.bf16 (!%p989_p1), %v1006_v28, %v1004_v27  ;;  %v1008_v33 = vld [vmem:[%s2507_s11 + $0x68] sm:$0xff] (!%p989_p1)  ;;  %v1010_v34 = vld [vmem:[%s2507_s11 + $0x78] sm:$0xff] (!%p989_p1)  ;;  %v1843_v35 = vpack.c.bf16 (!%p989_p1), %v1005_v32, %v1003_v31  ;;  %v1007_v37 = vld [vmem:[%s2507_s11 + $0x60] sm:$0xff] (!%p989_p1) }
 0x516   : > { %1838 = vmatprep.subr.bf16.mxu0 (!%p989_p1), %v1837_v24  ;;  %v1845_v36 = vpack.c.bf16 (!%p989_p1), %v1010_v34, %v1008_v33  ;;  %v1009_v38 = vld [vmem:[%s2507_s11 + $0x70] sm:$0xff] (!%p989_p1)  ;;  %v1012_v39 = vld [vmem:[%s2507_s11 + $0x88] sm:$0xff] (!%p989_p1)  ;;  %v1014_v40 = vld [vmem:[%s2507_s11 + $0x98] sm:$0xff] (!%p989_p1) }
 0x517   : > { %v1847_v41 = vpack.c.bf16 (!%p989_p1), %v1009_v38, %v1007_v37  ;;  %v1849_v42 = vpack.c.bf16 (!%p989_p1), %v1014_v40, %v1012_v39  ;;  %v1011_v43 = vld [vmem:[%s2507_s11 + $0x80] sm:$0xff] (!%p989_p1)  ;;  %v1013_v44 = vld [vmem:[%s2507_s11 + $0x90] sm:$0xff] (!%p989_p1)  ;;  %v1016_v45 = vld [vmem:[%s2507_s11 + $0xa8] sm:$0xff] (!%p989_p1) }
 0x518   : > { %v1018_v46 = vld [vmem:[%s2507_s11 + $0xb8] sm:$0xff] (!%p989_p1)  ;;  %v1851_v47 = vpack.c.bf16 (!%p989_p1), %v1013_v44, %v1011_v43  ;;  %v1015_v49 = vld [vmem:[%s2507_s11 + $0xa0] sm:$0xff] (!%p989_p1)  ;;  %v1017_v50 = vld [vmem:[%s2507_s11 + $0xb0] sm:$0xff] (!%p989_p1) }
 0x519   : > { %1840 = vmatpush1.bf16.msra.mxu0 %v1839_v29  ;;  %v1853_v48 = vpack.c.bf16 %v1018_v46, %v1016_v45  ;;  %v1020_v51 = vld [vmem:[%s2507_s11 + $0xc8] sm:$0xff]  ;;  %v1022_v52 = vld [vmem:[%s2507_s11 + $0xd8] sm:$0xff]  ;;  %v1855_v53 = vpack.c.bf16 %v1017_v50, %v1015_v49  ;;  %v1019_v55 = vld [vmem:[%s2507_s11 + $0xc0] sm:$0xff] }
 0x51a   : > { %1842 = vmatprep.subr.bf16.mxu0 %v1841_v30  ;;  %v1857_v54 = vpack.c.bf16 %v1022_v52, %v1020_v51  ;;  %v1021_v56 = vld [vmem:[%s2507_s11 + $0xd0] sm:$0xff]  ;;  %v994_v57 = vld [vmem:[#allocation4 + $0x8] sm:$0xff]  ;;  %v1024_v58 = vld [vmem:[%s2507_s11 + $0xe8] sm:$0xff]  ;;  %v1060_v51 = vlaneseq }
 0x51b   : > { %v1026_v59 = vld [vmem:[%s2507_s11 + $0xf8] sm:$0xff]  ;;  %1134 = vmatprep.mubr.f32.mxu0 %v994_v57  ;;  %v1859_v60 = vpack.c.bf16 %v1021_v56, %v1019_v55  ;;  %v1023_v62 = vld [vmem:[%s2507_s11 + $0xe0] sm:$0xff]  ;;  %v1025_v63 = vld [vmem:[%s2507_s11 + $0xf0] sm:$0xff] }
 0x51c   : > { %v1861_v61 = vpack.c.bf16 %v1026_v59, %v1024_v58  ;;  %v1028_v1 = vld [vmem:[%s2507_s11 + $0x108] sm:$0xff]  ;;  %v1030_v2 = vld [vmem:[%s2507_s11 + $0x118] sm:$0xff]  ;;  %v1863_v3 = vpack.c.bf16 %v1025_v63, %v1023_v62  ;;  %v1027_v5 = vld [vmem:[%s2507_s11 + $0x100] sm:$0xff]  ;;  %v1061_v52 = vshrl.u32 %v1060_v51, 7 }
 0x51d   : > { %1844 = vmatpush1.bf16.msra.mxu0 %v1843_v35  ;;  %v1865_v4 = vpack.c.bf16 %v1030_v2, %v1028_v1  ;;  %v1029_v6 = vld [vmem:[%s2507_s11 + $0x110] sm:$0xff]  ;;  %v1032_v7 = vld [vmem:[%s2507_s11 + $0x128] sm:$0xff]  ;;  %v1034_v8 = vld [vmem:[%s2507_s11 + $0x138] sm:$0xff] }
 0x51e   : > { %1846 = vmatprep.subr.bf16.mxu0 %v1845_v36  ;;  %v1867_v9 = vpack.c.bf16 %v1029_v6, %v1027_v5  ;;  %v1869_v10 = vpack.c.bf16 %v1034_v8, %v1032_v7  ;;  %v1031_v11 = vld [vmem:[%s2507_s11 + $0x120] sm:$0xff]  ;;  %v1033_v12 = vld [vmem:[%s2507_s11 + $0x130] sm:$0xff]  ;;  %v1036_v13 = vld [vmem:[%s2507_s11 + $0x148] sm:$0xff] }
 0x51f   : > { %v1038_v14 = vld [vmem:[%s2507_s11 + $0x158] sm:$0xff]  ;;  %v1871_v15 = vpack.c.bf16 %v1033_v12, %v1031_v11  ;;  %v1035_v17 = vld [vmem:[%s2507_s11 + $0x140] sm:$0xff]  ;;  %v1037_v18 = vld [vmem:[%s2507_s11 + $0x150] sm:$0xff] }
 0x520   : > { %v1873_v16 = vpack.c.bf16 %v1038_v14, %v1036_v13  ;;  %v1040_v19 = vld [vmem:[%s2507_s11 + $0x168] sm:$0xff]  ;;  %v1042_v20 = vld [vmem:[%s2507_s11 + $0x178] sm:$0xff]  ;;  %v1875_v21 = vpack.c.bf16 %v1037_v18, %v1035_v17  ;;  %v1039_v23 = vld [vmem:[%s2507_s11 + $0x160] sm:$0xff] }
 0x521   : > { %1848 = vmatpush1.bf16.msra.mxu0 %v1847_v41  ;;  %v1877_v22 = vpack.c.bf16 %v1042_v20, %v1040_v19  ;;  %v1041_v24 = vld [vmem:[%s2507_s11 + $0x170] sm:$0xff]  ;;  %v1044_v25 = vld [vmem:[%s2507_s11 + $0x188] sm:$0xff]  ;;  %v1046_v26 = vld [vmem:[%s2507_s11 + $0x198] sm:$0xff] }
 0x522   : > { %1850 = vmatprep.subr.bf16.mxu0 %v1849_v42  ;;  %v1879_v27 = vpack.c.bf16 %v1041_v24, %v1039_v23  ;;  %v1881_v28 = vpack.c.bf16 %v1046_v26, %v1044_v25  ;;  %v1043_v29 = vld [vmem:[%s2507_s11 + $0x180] sm:$0xff]  ;;  %v1045_v30 = vld [vmem:[%s2507_s11 + $0x190] sm:$0xff]  ;;  %v1048_v31 = vld [vmem:[%s2507_s11 + $0x1a8] sm:$0xff] }
 0x523   : > { %v1050_v32 = vld [vmem:[%s2507_s11 + $0x1b8] sm:$0xff]  ;;  %v1883_v33 = vpack.c.bf16 %v1045_v30, %v1043_v29  ;;  %v1047_v35 = vld [vmem:[%s2507_s11 + $0x1a0] sm:$0xff]  ;;  %v1049_v36 = vld [vmem:[%s2507_s11 + $0x1b0] sm:$0xff] }
 0x524   : > { %v1885_v34 = vpack.c.bf16 %v1050_v32, %v1048_v31  ;;  %v1052_v37 = vld [vmem:[%s2507_s11 + $0x1c8] sm:$0xff]  ;;  %v1054_v38 = vld [vmem:[%s2507_s11 + $0x1d8] sm:$0xff]  ;;  %v1887_v39 = vpack.c.bf16 %v1049_v36, %v1047_v35  ;;  %v1051_v41 = vld [vmem:[%s2507_s11 + $0x1c0] sm:$0xff] }
 0x525   : > { %1852 = vmatpush1.bf16.msra.mxu0 %v1851_v47  ;;  %v1889_v40 = vpack.c.bf16 %v1054_v38, %v1052_v37  ;;  %v1053_v42 = vld [vmem:[%s2507_s11 + $0x1d0] sm:$0xff]  ;;  %v1056_v43 = vld [vmem:[%s2507_s11 + $0x1e8] sm:$0xff]  ;;  %v1058_v44 = vld [vmem:[%s2507_s11 + $0x1f8] sm:$0xff] }
 0x526   : > { %1854 = vmatprep.subr.bf16.mxu0 %v1853_v48  ;;  %v1891_v45 = vpack.c.bf16 %v1053_v42, %v1051_v41  ;;  %v1893_v46 = vpack.c.bf16 %v1058_v44, %v1056_v43  ;;  %v1055_v47 = vld [vmem:[%s2507_s11 + $0x1e0] sm:$0xff]  ;;  %v1057_v48 = vld [vmem:[%s2507_s11 + $0x1f0] sm:$0xff] }
 0x527   : > { %v1895_v49 = vpack.c.bf16 %v1057_v48, %v1055_v47  ;;  %v993_v50 = vld [vmem:[#allocation4] sm:$0xff] }
 0x529   : > { %1856 = vmatpush1.bf16.msra.mxu0 %v1855_v53  ;;  %v1062_v53 = vsub.s32 0, %v1061_v52 }
 0x52a   : > { %1858 = vmatprep.subr.bf16.mxu0 %v1857_v54  ;;  %v1066_v54 = vsub.s32 1, %v1061_v52 }
 0x52b   : > { %v1063_v55 = vrot.slane %v2516_v0, %v1062_v53 }
 0x52c   : > { %v1067_v56 = vrot.slane %v2516_v0, %v1066_v54 }
 0x52d   : > { %1860 = vmatpush1.bf16.msra.mxu0 %v1859_v60 }
 0x52e   : > { %1862 = vmatprep.subr.bf16.mxu0 %v1861_v61 }
 0x531   : > { %1864 = vmatpush1.bf16.msra.mxu0 %v1863_v3 }
 0x532   : > { %1866 = vmatprep.subr.bf16.mxu0 %v1865_v4 }
 0x535   : > { %1868 = vmatpush1.bf16.msra.mxu0 %v1867_v9 }
 0x536   : > { %1870 = vmatprep.subr.bf16.mxu0 %v1869_v10 }
 0x539   : > { %1872 = vmatpush1.bf16.msra.mxu0 %v1871_v15 }
 0x53a   : > { %1874 = vmatprep.subr.bf16.mxu0 %v1873_v16 }
 0x53d   : > { %1876 = vmatpush1.bf16.msra.mxu0 %v1875_v21 }
 0x53e   : > { %1878 = vmatprep.subr.bf16.mxu0 %v1877_v22 }
 0x541   : > { %1880 = vmatpush1.bf16.msra.mxu0 %v1879_v27 }
 0x542   : > { %1882 = vmatprep.subr.bf16.mxu0 %v1881_v28 }
 0x545   : > { %1884 = vmatpush1.bf16.msra.mxu0 %v1883_v33 }
 0x546   : > { %1886 = vmatprep.subr.bf16.mxu0 %v1885_v34 }
 0x549   : > { %1888 = vmatpush1.bf16.msra.mxu0 %v1887_v39 }
 0x54a   : > { %1890 = vmatprep.subr.bf16.mxu0 %v1889_v40 }
 0x54d   : > { %1892 = vmatpush1.bf16.msra.mxu0 %v1891_v45 }
 0x54e   : > { %1894 = vmatprep.subr.bf16.mxu0 %v1893_v46 }
 0x551   : > { %1896 = vmatpush1.bf16.msra.mxu0 %v1895_v49 }
 0x554   : > { %1135 = vmatmul.mubr.f32.vlgmr.msra.gmra.mrb[0].mxu0 %v993_v50 }
 0x627   : > { %v1136_v57 = vpop.f32.mrb[0].mxu0 }
 0x628   : > { %v1137_v58 = vadd.f32 %v1136_v57, %v1063_v55  ;;  %v1138_v59 = vpop.f32.mrb[1].mxu0 }
 0x629   : > { %v1139_v60 = vadd.f32 %v1138_v59, %v1067_v56 }
 0x62a   : > { %1141 = vst [vmem:[#allocation12] sm:$0xff] %v1137_v58 }
 0x62b   : > { %1142 = vst [vmem:[#allocation12 + $0x8] sm:$0xff] %v1139_v60 }
 0x62c PF: > { %1146 = sbr.rel (%p988_p11) target bundleno = 1863 (0x747), region = 68  ;;  %v1150_v61 = vld [vmem:[%s2507_s11 + $0x8] sm:$0xff] (!%p988_p11)  ;;  %v1152_v62 = vld [vmem:[%s2507_s11 + $0x18] sm:$0xff] (!%p988_p11)  ;;  %v1149_v63 = vld [vmem:[%s2507_s11] sm:$0xff] (!%p988_p11) }
 0x62d   : > { %v1897_v1 = vpack.c.bf16 (!%p988_p11), %v1152_v62, %v1150_v61  ;;  %v1151_v2 = vld [vmem:[%s2507_s11 + $0x10] sm:$0xff] (!%p988_p11)  ;;  %v1154_v3 = vld [vmem:[%s2507_s11 + $0x28] sm:$0xff] (!%p988_p11)  ;;  %v1156_v4 = vld [vmem:[%s2507_s11 + $0x38] sm:$0xff] (!%p988_p11) }
 0x62e   : > { %v1899_v5 = vpack.c.bf16 (!%p988_p11), %v1151_v2, %v1149_v63  ;;  %v1901_v6 = vpack.c.bf16 (!%p988_p11), %v1156_v4, %v1154_v3  ;;  %v1153_v7 = vld [vmem:[%s2507_s11 + $0x20] sm:$0xff] (!%p988_p11)  ;;  %v1155_v8 = vld [vmem:[%s2507_s11 + $0x30] sm:$0xff] (!%p988_p11)  ;;  %v1158_v9 = vld [vmem:[%s2507_s11 + $0x48] sm:$0xff] (!%p988_p11) }
 0x62f   : > { %1898 = vmatprep.subr.bf16.mxu0 (!%p988_p11), %v1897_v1  ;;  %v1160_v10 = vld [vmem:[%s2507_s11 + $0x58] sm:$0xff] (!%p988_p11)  ;;  %v1903_v11 = vpack.c.bf16 (!%p988_p11), %v1155_v8, %v1153_v7  ;;  %v1157_v13 = vld [vmem:[%s2507_s11 + $0x40] sm:$0xff] (!%p988_p11)  ;;  %v1159_v14 = vld [vmem:[%s2507_s11 + $0x50] sm:$0xff] (!%p988_p11) }
 0x630   : > { %1900 = vmatpush1.bf16.msra.mxu0 (!%p988_p11), %v1899_v5  ;;  %v1905_v12 = vpack.c.bf16 (!%p988_p11), %v1160_v10, %v1158_v9  ;;  %v1162_v15 = vld [vmem:[%s2507_s11 + $0x68] sm:$0xff] (!%p988_p11)  ;;  %v1164_v16 = vld [vmem:[%s2507_s11 + $0x78] sm:$0xff] (!%p988_p11)  ;;  %v1907_v17 = vpack.c.bf16 (!%p988_p11), %v1159_v14, %v1157_v13  ;;  %v1161_v19 = vld [vmem:[%s2507_s11 + $0x60] sm:$0xff] (!%p988_p11) }
 0x631   : > { %1902 = vmatprep.subr.bf16.mxu0 (!%p988_p11), %v1901_v6  ;;  %v1909_v18 = vpack.c.bf16 (!%p988_p11), %v1164_v16, %v1162_v15  ;;  %v1163_v20 = vld [vmem:[%s2507_s11 + $0x70] sm:$0xff] (!%p988_p11)  ;;  %v1166_v21 = vld [vmem:[%s2507_s11 + $0x88] sm:$0xff] (!%p988_p11)  ;;  %v1168_v22 = vld [vmem:[%s2507_s11 + $0x98] sm:$0xff] (!%p988_p11) }
 0x632   : > { %v1911_v23 = vpack.c.bf16 (!%p988_p11), %v1163_v20, %v1161_v19  ;;  %v1913_v24 = vpack.c.bf16 (!%p988_p11), %v1168_v22, %v1166_v21  ;;  %v1165_v25 = vld [vmem:[%s2507_s11 + $0x80] sm:$0xff] (!%p988_p11)  ;;  %v1167_v26 = vld [vmem:[%s2507_s11 + $0x90] sm:$0xff] (!%p988_p11)  ;;  %v1170_v27 = vld [vmem:[%s2507_s11 + $0xa8] sm:$0xff] (!%p988_p11) }
 0x633   : > { %v1172_v28 = vld [vmem:[%s2507_s11 + $0xb8] sm:$0xff]  ;;  %v1915_v29 = vpack.c.bf16 %v1167_v26, %v1165_v25  ;;  %v1169_v31 = vld [vmem:[%s2507_s11 + $0xa0] sm:$0xff]  ;;  %v1171_v32 = vld [vmem:[%s2507_s11 + $0xb0] sm:$0xff] }
 0x634   : > { %1904 = vmatpush1.bf16.msra.mxu0 %v1903_v11  ;;  %v1917_v30 = vpack.c.bf16 %v1172_v28, %v1170_v27  ;;  %v1174_v33 = vld [vmem:[%s2507_s11 + $0xc8] sm:$0xff]  ;;  %v1176_v34 = vld [vmem:[%s2507_s11 + $0xd8] sm:$0xff]  ;;  %v1919_v35 = vpack.c.bf16 %v1171_v32, %v1169_v31  ;;  %v1173_v37 = vld [vmem:[%s2507_s11 + $0xc0] sm:$0xff] }
 0x635   : > { %1906 = vmatprep.subr.bf16.mxu0 %v1905_v12  ;;  %v1921_v36 = vpack.c.bf16 %v1176_v34, %v1174_v33  ;;  %v1175_v38 = vld [vmem:[%s2507_s11 + $0xd0] sm:$0xff]  ;;  %v1148_v39 = vld [vmem:[#allocation5 + $0x8] sm:$0xff]  ;;  %v1180_v41 = vld [vmem:[%s2507_s11 + $0xf8] sm:$0xff]  ;;  %v1214_v33 = vlaneseq }
 0x636   : > { %v1178_v40 = vld [vmem:[%s2507_s11 + $0xe8] sm:$0xff]  ;;  %1288 = vmatprep.mubr.f32.mxu0 %v1148_v39  ;;  %v1923_v42 = vpack.c.bf16 %v1175_v38, %v1173_v37  ;;  %v1177_v44 = vld [vmem:[%s2507_s11 + $0xe0] sm:$0xff]  ;;  %v1179_v45 = vld [vmem:[%s2507_s11 + $0xf0] sm:$0xff] }
 0x637   : > { %v1925_v43 = vpack.c.bf16 %v1180_v41, %v1178_v40  ;;  %v1182_v46 = vld [vmem:[%s2507_s11 + $0x108] sm:$0xff]  ;;  %v1184_v47 = vld [vmem:[%s2507_s11 + $0x118] sm:$0xff]  ;;  %v1927_v48 = vpack.c.bf16 %v1179_v45, %v1177_v44  ;;  %v1181_v50 = vld [vmem:[%s2507_s11 + $0x100] sm:$0xff]  ;;  %v1215_v34 = vshrl.u32 %v1214_v33, 7 }
 0x638   : > { %1908 = vmatpush1.bf16.msra.mxu0 %v1907_v17  ;;  %v1929_v49 = vpack.c.bf16 %v1184_v47, %v1182_v46  ;;  %v1183_v51 = vld [vmem:[%s2507_s11 + $0x110] sm:$0xff]  ;;  %v1186_v52 = vld [vmem:[%s2507_s11 + $0x128] sm:$0xff]  ;;  %v1188_v53 = vld [vmem:[%s2507_s11 + $0x138] sm:$0xff] }
 0x639   : > { %1910 = vmatprep.subr.bf16.mxu0 %v1909_v18  ;;  %v1931_v54 = vpack.c.bf16 %v1183_v51, %v1181_v50  ;;  %v1933_v55 = vpack.c.bf16 %v1188_v53, %v1186_v52  ;;  %v1185_v56 = vld [vmem:[%s2507_s11 + $0x120] sm:$0xff]  ;;  %v1187_v57 = vld [vmem:[%s2507_s11 + $0x130] sm:$0xff]  ;;  %v1190_v58 = vld [vmem:[%s2507_s11 + $0x148] sm:$0xff] }
 0x63a   : > { %v1192_v59 = vld [vmem:[%s2507_s11 + $0x158] sm:$0xff]  ;;  %v1935_v60 = vpack.c.bf16 %v1187_v57, %v1185_v56  ;;  %v1189_v62 = vld [vmem:[%s2507_s11 + $0x140] sm:$0xff]  ;;  %v1191_v63 = vld [vmem:[%s2507_s11 + $0x150] sm:$0xff] }
 0x63b   : > { %v1937_v61 = vpack.c.bf16 %v1192_v59, %v1190_v58  ;;  %v1194_v1 = vld [vmem:[%s2507_s11 + $0x168] sm:$0xff]  ;;  %v1196_v2 = vld [vmem:[%s2507_s11 + $0x178] sm:$0xff]  ;;  %v1939_v3 = vpack.c.bf16 %v1191_v63, %v1189_v62  ;;  %v1193_v5 = vld [vmem:[%s2507_s11 + $0x160] sm:$0xff] }
 0x63c   : > { %1912 = vmatpush1.bf16.msra.mxu0 %v1911_v23  ;;  %v1941_v4 = vpack.c.bf16 %v1196_v2, %v1194_v1  ;;  %v1195_v6 = vld [vmem:[%s2507_s11 + $0x170] sm:$0xff]  ;;  %v1198_v7 = vld [vmem:[%s2507_s11 + $0x188] sm:$0xff]  ;;  %v1200_v8 = vld [vmem:[%s2507_s11 + $0x198] sm:$0xff] }
 0x63d   : > { %1914 = vmatprep.subr.bf16.mxu0 %v1913_v24  ;;  %v1943_v9 = vpack.c.bf16 %v1195_v6, %v1193_v5  ;;  %v1945_v10 = vpack.c.bf16 %v1200_v8, %v1198_v7  ;;  %v1197_v11 = vld [vmem:[%s2507_s11 + $0x180] sm:$0xff]  ;;  %v1199_v12 = vld [vmem:[%s2507_s11 + $0x190] sm:$0xff]  ;;  %v1202_v13 = vld [vmem:[%s2507_s11 + $0x1a8] sm:$0xff] }
 0x63e   : > { %v1204_v14 = vld [vmem:[%s2507_s11 + $0x1b8] sm:$0xff]  ;;  %v1947_v15 = vpack.c.bf16 %v1199_v12, %v1197_v11  ;;  %v1201_v17 = vld [vmem:[%s2507_s11 + $0x1a0] sm:$0xff]  ;;  %v1203_v18 = vld [vmem:[%s2507_s11 + $0x1b0] sm:$0xff] }
 0x63f   : > { %v1949_v16 = vpack.c.bf16 %v1204_v14, %v1202_v13  ;;  %v1206_v19 = vld [vmem:[%s2507_s11 + $0x1c8] sm:$0xff]  ;;  %v1208_v20 = vld [vmem:[%s2507_s11 + $0x1d8] sm:$0xff]  ;;  %v1951_v21 = vpack.c.bf16 %v1203_v18, %v1201_v17  ;;  %v1205_v23 = vld [vmem:[%s2507_s11 + $0x1c0] sm:$0xff] }
 0x640   : > { %1916 = vmatpush1.bf16.msra.mxu0 %v1915_v29  ;;  %v1953_v22 = vpack.c.bf16 %v1208_v20, %v1206_v19  ;;  %v1207_v24 = vld [vmem:[%s2507_s11 + $0x1d0] sm:$0xff]  ;;  %v1210_v25 = vld [vmem:[%s2507_s11 + $0x1e8] sm:$0xff]  ;;  %v1212_v26 = vld [vmem:[%s2507_s11 + $0x1f8] sm:$0xff] }
 0x641   : > { %1918 = vmatprep.subr.bf16.mxu0 %v1917_v30  ;;  %v1955_v27 = vpack.c.bf16 %v1207_v24, %v1205_v23  ;;  %v1957_v28 = vpack.c.bf16 %v1212_v26, %v1210_v25  ;;  %v1209_v29 = vld [vmem:[%s2507_s11 + $0x1e0] sm:$0xff]  ;;  %v1211_v30 = vld [vmem:[%s2507_s11 + $0x1f0] sm:$0xff] }
 0x642   : > { %v1959_v31 = vpack.c.bf16 %v1211_v30, %v1209_v29  ;;  %v1147_v32 = vld [vmem:[#allocation5] sm:$0xff] }
 0x644   : > { %1920 = vmatpush1.bf16.msra.mxu0 %v1919_v35  ;;  %v1216_v35 = vsub.s32 0, %v1215_v34 }
 0x645   : > { %1922 = vmatprep.subr.bf16.mxu0 %v1921_v36  ;;  %v1220_v36 = vsub.s32 1, %v1215_v34 }
 0x646   : > { %v1217_v37 = vrot.slane %v2516_v0, %v1216_v35 }
 0x647   : > { %v1221_v38 = vrot.slane %v2516_v0, %v1220_v36 }
 0x648   : > { %1924 = vmatpush1.bf16.msra.mxu0 %v1923_v42 }
 0x649   : > { %1926 = vmatprep.subr.bf16.mxu0 %v1925_v43 }
 0x64c   : > { %1928 = vmatpush1.bf16.msra.mxu0 %v1927_v48 }
 0x64d   : > { %1930 = vmatprep.subr.bf16.mxu0 %v1929_v49 }
 0x650   : > { %1932 = vmatpush1.bf16.msra.mxu0 %v1931_v54 }
 0x651   : > { %1934 = vmatprep.subr.bf16.mxu0 %v1933_v55 }
 0x654   : > { %1936 = vmatpush1.bf16.msra.mxu0 %v1935_v60 }
 0x655   : > { %1938 = vmatprep.subr.bf16.mxu0 %v1937_v61 }
 0x658   : > { %1940 = vmatpush1.bf16.msra.mxu0 %v1939_v3 }
 0x659   : > { %1942 = vmatprep.subr.bf16.mxu0 %v1941_v4 }
 0x65c   : > { %1944 = vmatpush1.bf16.msra.mxu0 %v1943_v9 }
 0x65d   : > { %1946 = vmatprep.subr.bf16.mxu0 %v1945_v10 }
 0x660   : > { %1948 = vmatpush1.bf16.msra.mxu0 %v1947_v15 }
 0x661   : > { %1950 = vmatprep.subr.bf16.mxu0 %v1949_v16 }
 0x664   : > { %1952 = vmatpush1.bf16.msra.mxu0 %v1951_v21 }
 0x665   : > { %1954 = vmatprep.subr.bf16.mxu0 %v1953_v22 }
 0x668   : > { %1956 = vmatpush1.bf16.msra.mxu0 %v1955_v27 }
 0x669   : > { %1958 = vmatprep.subr.bf16.mxu0 %v1957_v28 }
 0x66c   : > { %1960 = vmatpush1.bf16.msra.mxu0 %v1959_v31 }
 0x66f   : > { %1289 = vmatmul.mubr.f32.vlgmr.msra.gmra.mrb[0].mxu0 %v1147_v32 }
 0x742   : > { %v1290_v39 = vpop.f32.mrb[0].mxu0 }
 0x743   : > { %v1291_v40 = vadd.f32 %v1290_v39, %v1217_v37  ;;  %v1292_v41 = vpop.f32.mrb[1].mxu0 }
 0x744   : > { %v1293_v42 = vadd.f32 %v1292_v41, %v1221_v38 }
 0x745   : > { %1295 = vst [vmem:[%s2518_s13] sm:$0xff] %v1291_v40 }
 0x746   : > { %1296 = vst [vmem:[%s2518_s13 + $0x8] sm:$0xff] %v1293_v42 }
 0x747 PF: > { %s2276_s11 = smov [#allocation12]   ;;  %s1558_s29 = sadd.s32 4294967291, %s2396_s12 }
 0x748   : > { %s1322_s17 = sshll.u32 %s2276_s11, 4  ;;  %p1330_p10 = scmp.gt.s32.totalorder %s1558_s29, 0  ;;  %s1323_s17 = int_to_ptr.vmem [resolvable:$true] %s1322_s17 }
 0x749   : > { %s2144_s20 = scalar_lea.vmem %s1323_s17, 256  ;;  %p3046_p12 = scmp.eq.s32.totalorder %s2396_s12, 6 }
 0x74a   : > { %p2145_p4 = scmp.ne.s32.totalorder %s1323_s17, %s2144_s20  ;;  %s2150_s9 = scalar_lea.vmem %s1323_s17, 512 }
 0x74b   : > { %p2151_p3 = scmp.lt.s32.totalorder %s1323_s17, %s1323_s17  ;;  %p2152_p6 = scmp.lt.s32.totalorder %s2150_s9, %s2144_s20 }
 0x74c   : > { %p2146_p9 = pnand %p2145_p4, %p3046_p12 }
 0x74d   : > { %p2153_p13 = por %p2152_p6, %p2151_p3 }
 0x74e   : > { %p2147_p8 = pneg %p2146_p9 }
 0x750   : > { %p2154_p2 = pnand %p2153_p13, %p2147_p8 }
 0x752   : > { %2157 = shalt.err (!%p2154_p2)
}
 0x753   : > { %s2158_s26 = scalar_lea.hbm %s3013_s3, 256  ;;  %p3047_p5 = pmov %p3046_p12 }
 0x754   : > { %p2159_p7 = scmp.ne.s32.totalorder %s3013_s3, %s2158_s26  ;;  %p2164_p1 = scmp.lt.u32.totalorder %s2158_s26, %s3013_s3 }
 0x756   : > { %p2160_p0 = pnand %p2159_p7, %p3047_p5 }
 0x758   : > { %p2161_p11 = pneg %p2160_p0 }
 0x75a   : > { %p2166_p4 = pnand %p2164_p1, %p2161_p11 }
 0x75c   : > { %2169 = shalt.err (!%p2166_p4)
}
 0x75d   : > { %p3048_p12 = pmov %p3047_p5  ;;  %p1559_p9 = scmp.lt.s32.totalorder %s1558_s29, 1 }
 0x75e   : > { %s1331_s23 = scalar_select %p1330_p10, %s1558_s29, 0 }
 0x75f   : > { %1969 = dma.vmem_to_hbm [thread:$0]  (%p3048_p12), %s1323_s17, 256, %s3013_s3, [#allocation8]  }
 0x760   : > { %s1341_s1 = sshll.u32 %s2518_s13, 4  ;;  %s3070_s23 = smov (!%p1559_p9, %s1331_s23), 1  ;;  %s2959_s1 = int_to_ptr.vmem [resolvable:$true] %s1341_s1 }
 0x761   : > { %s1576_s11 = sshll.u32 %s3070_s23, 8  ;;  %s1303_s10 = scalar_lea.sflag [#allocation14], %s292_s25 }
 0x762   : > { %s1339_s9 = scalar_lea.hbm %s3014_s4, %s1576_s11  ;;  %s2170_s30 = scalar_lea.vmem %s2959_s1, 256 }
 0x763   : > { %p2171_p8 = scmp.ne.s32.totalorder %s2959_s1, %s2170_s30  ;;  %p3049_p3 = scmp.ne.s32.totalorder %s3034_s24, 0 }
 0x764   : > { %s2277_s17 = smov [#allocation13]  }
 0x765   : > { %p2172_p6 = pnand %p2171_p8, %p3049_p3  ;;  %s2174_s13 = sshll.u32 %s2277_s17, 4  ;;  %s2175_s13 = int_to_ptr.vmem [resolvable:$false] %s2174_s13 }
 0x766   : > { %s2176_s29 = scalar_lea.vmem %s2175_s13, 512  ;;  %p2177_p13 = scmp.lt.s32.totalorder %s2959_s1, %s2175_s13 }
 0x767   : > { %p2173_p10 = pneg %p2172_p6  ;;  %p2178_p2 = scmp.lt.s32.totalorder %s2176_s29, %s2170_s30 }
 0x769   : > { %p2179_p7 = por %p2178_p2, %p2177_p13 }
 0x76b   : > { %p2180_p5 = pnand %p2179_p7, %p2173_p10 }
 0x76d   : > { %2183 = shalt.err (!%p2180_p5)
}
 0x76e   : > { %s2184_s26 = scalar_lea.hbm %s1339_s9, 256  ;;  %s2188_s27 = scalar_lea.hbm %s3014_s4, 512 }
 0x76f   : > { %p2185_p0 = scmp.ne.s32.totalorder %s1339_s9, %s2184_s26  ;;  %p2189_p4 = scmp.lt.u32.totalorder %s1339_s9, %s3014_s4 }
 0x770   : > { %p2190_p12 = scmp.lt.u32.totalorder %s2188_s27, %s2184_s26  ;;  %p2192_p8 = scmp.lt.u32.totalorder %s2184_s26, %s1339_s9 }
 0x771   : > { %p2186_p11 = pnand %p2185_p0, %p3049_p3 }
 0x772   : > { %p2191_p9 = por %p2190_p12, %p2189_p4 }
 0x773   : > { %p2187_p1 = pneg %p2186_p11 }
 0x774   : > { %p2193_p6 = por %p2192_p8, %p2191_p9 }
 0x776   : > { %p2194_p10 = pnand %p2193_p6, %p2187_p1 }
 0x778   : > { %2197 = shalt.err (!%p2194_p10)
}
 0x779   : > { %1970 = dma.vmem_to_hbm [thread:$0]  (%p3049_p3), %s2959_s1, 256, %s1339_s9, %s1303_s10  }
 0x77a PF: > { %p1994_p13 = scmp.ge.s32.totalorder %s2268_s21, 2  ;;  %p3050_p2 = scmp.ne.s32.totalorder %s3032_s14, 0 }
 0x77c   : > { %p1985_p7 = pnand %p1994_p13, %p3050_p2 }
 0x77e   : > { %2235 = dma.done.wait (!%p1985_p7), [#allocation8], 256  }
 0x77f   : > { %2237 = vsyncadd (!%p1985_p7), [#allocation8], 4294967040  ;;  %s1362_s7 = sand.u32 1, %s2244_s15   ;;  %p3051_p5 = scmp.ne.s32.totalorder %s3035_s28, 0 }
 0x780   : > { %s1363_s18 = scalar_lea.sflag [#allocation14], %s1362_s7 }
 0x781   : > { %p1988_p0 = pnand %p1994_p13, %p3051_p5 }
 0x783   : > { %2239 = dma.done.wait (!%p1988_p0), %s1363_s18, 256  }
 0x784   : > { %2241 = vsyncadd (!%p1988_p0), %s1363_s18, 4294967040  ;;  %s3052_s24 = sld [smem:[#allocation19_spill]]  ;;  %s3053_s17 = sld [smem:[#allocation22_spill]] }
 0x785   : > { %s3054_s23 = sld [smem:[#allocation20_spill]]  ;;  %s3055_s20 = sld [smem:[#allocation21_spill]] }
 0x786   : > { %p22_p3 = scmp.ge.s32.totalorder %s2339_s22, 9   ;;  %s3056_s15 = smov %s2248_s16 }
 0x787   : > { %s3058_s18 = smov %s2260_s19  ;;  %s3060_s21 = smov %s2339_s22 }
 0x788   :  { %24 = sbr.rel (!%p22_p3) target bundleno = 12 (0xc), region = 142 }
 0x78a   : > { %s3057_s16 = smov %s3052_s24 }
 0x78b   : > { %s3059_s19 = smov %s3054_s23 }
 0x78f   :  { %1368 = vsyncpa [#allocation7], 1 }
 0x790   :  { %1370 = vsyncpa [#allocation7 + $0x1], 1 }
 0x791   :  { %1371 = vsyncpa [#allocation10], 1 }
 0x792   :  { %1373 = vsyncpa [#allocation10 + $0x1], 1 }
 0x793   :  { %1374 = vsyncpa [#allocation8], 1 }
 0x794   :  { %1376 = vsyncpa [#allocation8 + $0x1], 1 }
 0x795   :  { %1377 = vsyncpa [#allocation14], 1 }
 0x796   :  { %1379 = vsyncpa [#allocation14 + $0x1], 1 }

</bundles_post_ra>
